<compile_context>
chip_gen: v6e
topology: v6e:2x2x1
jax: 0.10.0
libtpu: 0.0.40
codegen_flags: <defaults>
</compile_context>

<pallas_src>
import functools

import jax
import jax.numpy as jnp
from jax.experimental import pallas as pl
from jax.experimental.pallas import tpu as pltpu


# ---------------------------------------------------------------------------
# Fused kernel
# ---------------------------------------------------------------------------
def _lstm_force_cell_kernel(
    x_ref, h_ref, c_ref,
    w_emb_ref, b_emb_ref,
    w_ih_ref, b_ih_ref,
    w_hh_ref, b_hh_ref,
    w_out_ref, b_out_ref,
    out_ref, h_out_ref, c_out_ref,
    *, hidden_size: int, matmul_dtype,
):
    def mm(a, w_ref):
        # MXU matmul; operands optionally bf16, accumulate in f32.
        return jnp.dot(a.astype(matmul_dtype),
                       w_ref[...].astype(matmul_dtype),
                       preferred_element_type=jnp.float32)

    x = x_ref[...].astype(jnp.float32)
    h = h_ref[...].astype(jnp.float32)
    c = c_ref[...].astype(jnp.float32)

    # --- input embedding + ReLU (intermediate stays on-chip, never hits HBM) ---
    emb = jnp.maximum(mm(x, w_emb_ref) + b_emb_ref[...], 0.0)

    # --- LSTMCell: gates in PyTorch order (i, f, g, o), epilogue in f32 (VPU) ---
    gates = (mm(emb, w_ih_ref) + b_ih_ref[...]
             + mm(h, w_hh_ref) + b_hh_ref[...])
    H = hidden_size
    i_g = jax.nn.sigmoid(gates[:, 0 * H:1 * H])
    f_g = jax.nn.sigmoid(gates[:, 1 * H:2 * H])
    g_g = jnp.tanh(gates[:, 2 * H:3 * H])
    o_g = jax.nn.sigmoid(gates[:, 3 * H:4 * H])

    c_new = f_g * c + i_g * g_g
    h_new = o_g * jnp.tanh(c_new)

    # --- output projection, scaled by 10 ---
    out = 10.0 * (mm(h_new, w_out_ref) + b_out_ref[...])

    out_ref[...] = out.astype(out_ref.dtype)
    h_out_ref[...] = h_new.astype(h_out_ref.dtype)
    c_out_ref[...] = c_new.astype(c_out_ref.dtype)


def lstm_force_cell(x, h, c, params, *, matmul_dtype=jnp.float32):
    """Fused forward pass.

    x: [B, input_size]   h, c: [B, rnn_size]
    params: (w_emb[I,E], b_emb[1,E], w_ih[E,4H], b_ih[1,4H],
             w_hh[H,4H], b_hh[1,4H], w_out[H,O], b_out[1,O])
    returns (outputs[B,O], h_new[B,H], c_new[B,H])
    """
    w_emb, b_emb, w_ih, b_ih, w_hh, b_hh, w_out, b_out = params
    B, I = x.shape
    E = w_emb.shape[1]
    H = h.shape[1]
    O = w_out.shape[1]
    assert w_emb.shape == (I, E) and b_emb.shape == (1, E)
    assert w_ih.shape == (E, 4 * H) and b_ih.shape == (1, 4 * H)
    assert w_hh.shape == (H, 4 * H) and b_hh.shape == (1, 4 * H)
    assert w_out.shape == (H, O) and b_out.shape == (1, O)
    assert c.shape == (B, H)

    vmem = pl.BlockSpec(memory_space=pltpu.MemorySpace.VMEM)
    kernel = functools.partial(
        _lstm_force_cell_kernel, hidden_size=H, matmul_dtype=matmul_dtype)

    return pl.pallas_call(
        kernel,
        out_shape=(
            jax.ShapeDtypeStruct((B, O), x.dtype),
            jax.ShapeDtypeStruct((B, H), h.dtype),
            jax.ShapeDtypeStruct((B, H), c.dtype),
        ),
        in_specs=[vmem] * 11,
        out_specs=(vmem, vmem, vmem),
    )(x, h, c, w_emb, b_emb, w_ih, b_ih, w_hh, b_hh, w_out, b_out)


# ---------------------------------------------------------------------------
# Deterministic synthetic parameters (PyTorch-style init, pre-transposed)
# ---------------------------------------------------------------------------
def init_params(key, input_size, embedding_size, rnn_size, output_size):
    def linear(key, fan_in, fan_out):
        kw, kb = jax.random.split(key)
        bound = 1.0 / jnp.sqrt(fan_in)
        w = jax.random.uniform(kw, (fan_in, fan_out), minval=-bound,
                               maxval=bound, dtype=jnp.float32)
        b = jax.random.uniform(kb, (1, fan_out), minval=-bound,
                               maxval=bound, dtype=jnp.float32)
        return w, b

    k_emb, k_ih, k_hh, k_out = jax.random.split(key, 4)
    w_emb, b_emb = linear(k_emb, input_size, embedding_size)
    # nn.LSTMCell init bound is 1/sqrt(hidden) for both ih and hh weights.
    bound = 1.0 / jnp.sqrt(rnn_size)
    k1, k2, k3, k4 = jax.random.split(k_ih, 4)
    w_ih = jax.random.uniform(k1, (embedding_size, 4 * rnn_size),
                              minval=-bound, maxval=bound, dtype=jnp.float32)
    b_ih = jax.random.uniform(k2, (1, 4 * rnn_size),
                              minval=-bound, maxval=bound, dtype=jnp.float32)
    w_hh = jax.random.uniform(k3, (rnn_size, 4 * rnn_size),
                              minval=-bound, maxval=bound, dtype=jnp.float32)
    b_hh = jax.random.uniform(k4, (1, 4 * rnn_size),
                              minval=-bound, maxval=bound, dtype=jnp.float32)
    w_out, b_out = linear(k_out, rnn_size, output_size)
    return (w_emb, b_emb, w_ih, b_ih, w_hh, b_hh, w_out, b_out)


# ---------------------------------------------------------------------------
# Pure-JAX reference (mirrors the PyTorch forward exactly)
# ---------------------------------------------------------------------------
def lstm_force_cell_ref(x, h, c, params):
    w_emb, b_emb, w_ih, b_ih, w_hh, b_hh, w_out, b_out = params
    H = h.shape[1]
    emb = jnp.maximum(x @ w_emb + b_emb, 0.0)
    gates = emb @ w_ih + b_ih + h @ w_hh + b_hh
    i_g = jax.nn.sigmoid(gates[:, 0 * H:1 * H])
    f_g = jax.nn.sigmoid(gates[:, 1 * H:2 * H])
    g_g = jnp.tanh(gates[:, 2 * H:3 * H])
    o_g = jax.nn.sigmoid(gates[:, 3 * H:4 * H])
    c_new = f_g * c + i_g * g_g
    h_new = o_g * jnp.tanh(c_new)
    out = 10.0 * (h_new @ w_out + b_out)
    return out, h_new, c_new


if __name__ == "__main__":
    key = jax.random.PRNGKey(0)
    batch = 8
    input_size = 7
    embedding_size = 32
    rnn_size = 256
    output_size = 4

    kx, kh, kc, kp = jax.random.split(key, 4)
    x = jax.random.normal(kx, (batch, input_size), dtype=jnp.float32)
    h = jax.random.normal(kh, (batch, rnn_size), dtype=jnp.float32) * 0.1
    c = jax.random.normal(kc, (batch, rnn_size), dtype=jnp.float32) * 0.1
    params = init_params(kp, input_size, embedding_size, rnn_size, output_size)

    # f32 MXU operands: exact path, tight tolerance.
    out, h_new, c_new = jax.block_until_ready(lstm_force_cell(x, h, c, params))
    out_r, h_r, c_r = lstm_force_cell_ref(x, h, c, params)
    assert out.shape == (batch, output_size)
    assert h_new.shape == (batch, rnn_size) and c_new.shape == (batch, rnn_size)
    assert jnp.allclose(out, out_r, atol=1e-4, rtol=1e-4)
    assert jnp.allclose(h_new, h_r, atol=1e-5, rtol=1e-5)
    assert jnp.allclose(c_new, c_r, atol=1e-5, rtol=1e-5)

    # bf16 MXU operands (f32 accumulate, f32 epilogue): fast path on v5e/v6e/v7x.
    out_b, h_b, c_b = jax.block_until_ready(
        lstm_force_cell(x, h, c, params, matmul_dtype=jnp.bfloat16))
    assert jnp.allclose(out_b, out_r, atol=5e-2, rtol=5e-2)
    assert jnp.allclose(h_b, h_r, atol=2e-2, rtol=5e-2)
    assert jnp.allclose(c_b, c_r, atol=2e-2, rtol=5e-2)

    print("KERNEL_OK")
</pallas_src>

<mosaic_0001>
module attributes {stable_mosaic.version = 11 : i64} {
  func.func @_lstm_force_cell_kernel(%arg0: memref<8x7xf32, #tpu.memory_space<vmem>>, %arg1: memref<8x256xf32, #tpu.memory_space<vmem>>, %arg2: memref<8x256xf32, #tpu.memory_space<vmem>>, %arg3: memref<7x32xf32, #tpu.memory_space<vmem>>, %arg4: memref<1x32xf32, #tpu.memory_space<vmem>>, %arg5: memref<32x1024xf32, #tpu.memory_space<vmem>>, %arg6: memref<1x1024xf32, #tpu.memory_space<vmem>>, %arg7: memref<256x1024xf32, #tpu.memory_space<vmem>>, %arg8: memref<1x1024xf32, #tpu.memory_space<vmem>>, %arg9: memref<256x4xf32, #tpu.memory_space<vmem>>, %arg10: memref<1x4xf32, #tpu.memory_space<vmem>>, %arg11: memref<8x4xf32, #tpu.memory_space<vmem>>, %arg12: memref<8x256xf32, #tpu.memory_space<vmem>>, %arg13: memref<8x256xf32, #tpu.memory_space<vmem>>) attributes {dimension_semantics = [], scalar_prefetch = 0 : i64, scratch_operands = 0 : i64, tpu.core_type = #tpu.core_type<tc>} {
    %c0 = arith.constant 0 : index
    %c0_0 = arith.constant 0 : index
    %0 = vector.load %arg0[%c0, %c0_0] : memref<8x7xf32, #tpu.memory_space<vmem>>, vector<8x7xf32>
    %c0_1 = arith.constant 0 : index
    %c0_2 = arith.constant 0 : index
    %1 = vector.load %arg1[%c0_1, %c0_2] : memref<8x256xf32, #tpu.memory_space<vmem>>, vector<8x256xf32>
    %c0_3 = arith.constant 0 : index
    %c0_4 = arith.constant 0 : index
    %2 = vector.load %arg2[%c0_3, %c0_4] : memref<8x256xf32, #tpu.memory_space<vmem>>, vector<8x256xf32>
    %c0_5 = arith.constant 0 : index
    %c0_6 = arith.constant 0 : index
    %3 = vector.load %arg3[%c0_5, %c0_6] : memref<7x32xf32, #tpu.memory_space<vmem>>, vector<7x32xf32>
    %cst = arith.constant dense<0.000000e+00> : vector<8x32xf32>
    %4 = tpu.matmul %0, %3, %cst {dimension_numbers = #tpu.dot_dimension_numbers<[1], [0], [0], [1], [0, 0, 1, 1], [], []>} : vector<8x7xf32>, vector<7x32xf32>, vector<8x32xf32> -> vector<8x32xf32>
    %c0_7 = arith.constant 0 : index
    %c0_8 = arith.constant 0 : index
    %5 = vector.load %arg4[%c0_7, %c0_8] : memref<1x32xf32, #tpu.memory_space<vmem>>, vector<1x32xf32>
    %6 = vector.broadcast %5 : vector<1x32xf32> to vector<8x32xf32>
    %7 = arith.addf %4, %6 : vector<8x32xf32>
    %cst_9 = arith.constant 0.000000e+00 : f32
    %8 = vector.broadcast %cst_9 : f32 to vector<8x32xf32>
    %9 = arith.maximumf %7, %8 : vector<8x32xf32>
    %c0_10 = arith.constant 0 : index
    %c0_11 = arith.constant 0 : index
    %10 = vector.load %arg5[%c0_10, %c0_11] : memref<32x1024xf32, #tpu.memory_space<vmem>>, vector<32x1024xf32>
    %cst_12 = arith.constant dense<0.000000e+00> : vector<8x1024xf32>
    %11 = tpu.matmul %9, %10, %cst_12 {dimension_numbers = #tpu.dot_dimension_numbers<[1], [0], [0], [1], [0, 0, 1, 1], [], []>} : vector<8x32xf32>, vector<32x1024xf32>, vector<8x1024xf32> -> vector<8x1024xf32>
    %c0_13 = arith.constant 0 : index
    %c0_14 = arith.constant 0 : index
    %12 = vector.load %arg6[%c0_13, %c0_14] : memref<1x1024xf32, #tpu.memory_space<vmem>>, vector<1x1024xf32>
    %13 = vector.broadcast %12 : vector<1x1024xf32> to vector<8x1024xf32>
    %14 = arith.addf %11, %13 : vector<8x1024xf32>
    %c0_15 = arith.constant 0 : index
    %c0_16 = arith.constant 0 : index
    %15 = vector.load %arg7[%c0_15, %c0_16] : memref<256x1024xf32, #tpu.memory_space<vmem>>, vector<256x1024xf32>
    %cst_17 = arith.constant dense<0.000000e+00> : vector<8x1024xf32>
    %16 = tpu.matmul %1, %15, %cst_17 {dimension_numbers = #tpu.dot_dimension_numbers<[1], [0], [0], [1], [0, 0, 1, 1], [], []>} : vector<8x256xf32>, vector<256x1024xf32>, vector<8x1024xf32> -> vector<8x1024xf32>
    %17 = arith.addf %14, %16 : vector<8x1024xf32>
    %c0_18 = arith.constant 0 : index
    %c0_19 = arith.constant 0 : index
    %18 = vector.load %arg8[%c0_18, %c0_19] : memref<1x1024xf32, #tpu.memory_space<vmem>>, vector<1x1024xf32>
    %19 = vector.broadcast %18 : vector<1x1024xf32> to vector<8x1024xf32>
    %20 = arith.addf %17, %19 : vector<8x1024xf32>
    %21 = vector.extract_strided_slice %20 {offsets = [0, 0], sizes = [8, 256], strides = [1, 1]} : vector<8x1024xf32> to vector<8x256xf32>
    %22 = arith.negf %21 : vector<8x256xf32>
    %23 = math.exp %22 : vector<8x256xf32>
    %cst_20 = arith.constant 1.000000e+00 : f32
    %24 = vector.broadcast %cst_20 : f32 to vector<8x256xf32>
    %25 = arith.addf %24, %23 : vector<8x256xf32>
    %26 = arith.divf %24, %25 : vector<8x256xf32>
    %27 = vector.extract_strided_slice %20 {offsets = [0, 256], sizes = [8, 256], strides = [1, 1]} : vector<8x1024xf32> to vector<8x256xf32>
    %28 = arith.negf %27 : vector<8x256xf32>
    %29 = math.exp %28 : vector<8x256xf32>
    %cst_21 = arith.constant 1.000000e+00 : f32
    %30 = vector.broadcast %cst_21 : f32 to vector<8x256xf32>
    %31 = arith.addf %30, %29 : vector<8x256xf32>
    %32 = arith.divf %30, %31 : vector<8x256xf32>
    %33 = vector.extract_strided_slice %20 {offsets = [0, 512], sizes = [8, 256], strides = [1, 1]} : vector<8x1024xf32> to vector<8x256xf32>
    %34 = math.tanh %33 : vector<8x256xf32>
    %35 = vector.extract_strided_slice %20 {offsets = [0, 768], sizes = [8, 256], strides = [1, 1]} : vector<8x1024xf32> to vector<8x256xf32>
    %36 = arith.negf %35 : vector<8x256xf32>
    %37 = math.exp %36 : vector<8x256xf32>
    %cst_22 = arith.constant 1.000000e+00 : f32
    %38 = vector.broadcast %cst_22 : f32 to vector<8x256xf32>
    %39 = arith.addf %38, %37 : vector<8x256xf32>
    %40 = arith.divf %38, %39 : vector<8x256xf32>
    %41 = arith.mulf %32, %2 : vector<8x256xf32>
    %42 = arith.mulf %26, %34 : vector<8x256xf32>
    %43 = arith.addf %41, %42 : vector<8x256xf32>
    %44 = math.tanh %43 : vector<8x256xf32>
    %45 = arith.mulf %40, %44 : vector<8x256xf32>
    %c0_23 = arith.constant 0 : index
    %c0_24 = arith.constant 0 : index
    %46 = vector.load %arg9[%c0_23, %c0_24] : memref<256x4xf32, #tpu.memory_space<vmem>>, vector<256x4xf32>
    %cst_25 = arith.constant dense<0.000000e+00> : vector<8x4xf32>
    %47 = tpu.matmul %45, %46, %cst_25 {dimension_numbers = #tpu.dot_dimension_numbers<[1], [0], [0], [1], [0, 0, 1, 1], [], []>} : vector<8x256xf32>, vector<256x4xf32>, vector<8x4xf32> -> vector<8x4xf32>
    %c0_26 = arith.constant 0 : index
    %c0_27 = arith.constant 0 : index
    %48 = vector.load %arg10[%c0_26, %c0_27] : memref<1x4xf32, #tpu.memory_space<vmem>>, vector<1x4xf32>
    %49 = vector.broadcast %48 : vector<1x4xf32> to vector<8x4xf32>
    %50 = arith.addf %47, %49 : vector<8x4xf32>
    %cst_28 = arith.constant 1.000000e+01 : f32
    %51 = vector.broadcast %cst_28 : f32 to vector<8x4xf32>
    %52 = arith.mulf %51, %50 : vector<8x4xf32>
    %c0_29 = arith.constant 0 : index
    %c0_30 = arith.constant 0 : index
    %53 = vector.load %arg11[%c0_29, %c0_30] : memref<8x4xf32, #tpu.memory_space<vmem>>, vector<8x4xf32>
    tpu.vector_store %arg11[%c0_29, %c0_30], %52 {strides = array<i32>} : memref<8x4xf32, #tpu.memory_space<vmem>>, vector<8x4xf32>,
    %c0_31 = arith.constant 0 : index
    %c0_32 = arith.constant 0 : index
    %54 = vector.load %arg12[%c0_31, %c0_32] : memref<8x256xf32, #tpu.memory_space<vmem>>, vector<8x256xf32>
    tpu.vector_store %arg12[%c0_31, %c0_32], %45 {strides = array<i32>} : memref<8x256xf32, #tpu.memory_space<vmem>>, vector<8x256xf32>,
    %c0_33 = arith.constant 0 : index
    %c0_34 = arith.constant 0 : index
    %55 = vector.load %arg13[%c0_33, %c0_34] : memref<8x256xf32, #tpu.memory_space<vmem>>, vector<8x256xf32>
    tpu.vector_store %arg13[%c0_33, %c0_34], %43 {strides = array<i32>} : memref<8x256xf32, #tpu.memory_space<vmem>>, vector<8x256xf32>,
    return
  }
}

</mosaic_0001>

<bundles_post_ra>
// kernel: tpu_custom_call.1
= control target key start
LH: loop header
LB: loop body
LE: loop exit
PB: predicated region body
PF: predicated region fallthrough
CT: control target
= control target key end

     0   :  { %19 = vsyncpa [#allocation3], 0  ;;  %s2075_s0 = inlined_call_operand.hbm [shape: f32[8,7], index: 0, kind: input, shape index: {}]   ;;  %s2076_s1 = inlined_call_operand.vmem [shape: f32[8,256], index: 1, kind: input, shape index: {}]   ;;  %s2077_s2 = inlined_call_operand.hbm [shape: f32[8,256], index: 2, kind: input, shape index: {}]   ;;  %s2078_s3 = inlined_call_operand.hbm [shape: f32[7,32], index: 3, kind: input, shape index: {}]   ;;  %s2079_s4 = inlined_call_operand.hbm [shape: f32[1,32], index: 4, kind: input, shape index: {}]   ;;  %s2080_s5 = inlined_call_operand.vmem [shape: f32[32,1024], index: 5, kind: input, shape index: {}]   ;;  %s2081_s6 = inlined_call_operand.hbm [shape: f32[1,1024], index: 6, kind: input, shape index: {}]   ;;  %s2082_s7 = inlined_call_operand.hbm [shape: f32[256,1024], index: 7, kind: input, shape index: {}]   ;;  %s2083_s8 = inlined_call_operand.hbm [shape: f32[1,1024], index: 8, kind: input, shape index: {}]   ;;  %s2084_s9 = inlined_call_operand.vmem [shape: f32[256,4], index: 9, kind: input, shape index: {}]   ;;  %s2085_s10 = inlined_call_operand.vmem [shape: f32[1,4], index: 10, kind: input, shape index: {}]   ;;  %s2086_s11 = inlined_call_operand.vmem [shape: f32[8,4], index: 11, kind: output, shape index: {0}]   ;;  %s2087_s12 = inlined_call_operand.hbm [shape: f32[8,256], index: 12, kind: output, shape index: {1}]   ;;  %s2088_s13 = inlined_call_operand.hbm [shape: f32[8,256], index: 13, kind: output, shape index: {2}]  }
   0x1   :  { %20 = vsyncpa [#allocation6], 0 }
   0x2   :  { %21 = vsyncpa [#allocation9], 0 }
   0x3   :  { %22 = vsyncpa [#allocation12], 0 }
   0x4   :  { %23 = vsyncpa [#allocation4], 0 }
   0x5   :  { %24 = vsyncpa [#allocation16], 0  ;;  %s1671_s25 = smov [#allocation5]   ;;  %s1672_s27 = smov [#allocation8]  }
   0x6   :  { %s43_s26 = sshll.u32 %s1671_s25, 4  ;;  %s63_s28 = sshll.u32 %s1672_s27, 4  ;;  %s44_s26 = int_to_ptr.vmem [resolvable:$true] %s43_s26  ;;  %s64_s28 = int_to_ptr.vmem [resolvable:$true] %s63_s28 }
   0x7   :  { %s1487_s29 = scalar_lea.vmem %s44_s26, 256  ;;  %p1492_p1 = scmp.lt.s32.totalorder %s44_s26, %s44_s26 }
   0x8   :  { %p1488_p0 = scmp.ne.s32.totalorder %s44_s26, %s1487_s29  ;;  %p1493_p2 = scmp.lt.s32.totalorder %s1487_s29, %s1487_s29 }
   0xa   :  { %p1494_p3 = por %p1493_p2, %p1492_p1 }
   0xc   :  { %p1495_p4 = pnand %p1494_p3, %p1488_p0 }
   0xe   :  { %1498 = shalt.err (!%p1495_p4)
}
   0xf   :  { %46 = dma.hbm_to_vmem [thread:$0]  %s2077_s2, 256, %s44_s26, [#allocation6]  }
  0x10   :  { %s1507_s15 = scalar_lea.vmem %s64_s28, 16  ;;  %s1511_s16 = scalar_lea.vmem %s64_s28, 32 }
  0x11   :  { %p1508_p5 = scmp.ne.s32.totalorder %s64_s28, %s1507_s15  ;;  %p1512_p6 = scmp.lt.s32.totalorder %s64_s28, %s64_s28 }
  0x12   :  { %p1513_p7 = scmp.lt.s32.totalorder %s1511_s16, %s1507_s15 }
  0x14   :  { %p1514_p8 = por %p1513_p7, %p1512_p6 }
  0x16   :  { %p1515_p9 = pnand %p1514_p8, %p1508_p5 }
  0x18   :  { %1518 = shalt.err (!%p1515_p9)
}
  0x19   :  { %66 = dma.hbm_to_vmem [thread:$0]  %s2079_s4, 16, %s64_s28, [#allocation9]  }
  0x1a   :  { %s1673_s19 = smov [#allocation11]  }
  0x1b   :  { %s84_s20 = sshll.u32 %s1673_s19, 4  ;;  %s85_s20 = int_to_ptr.vmem [resolvable:$true] %s84_s20 }
  0x1c   :  { %s1527_s21 = scalar_lea.vmem %s85_s20, 32768  ;;  %p1532_p11 = scmp.lt.s32.totalorder %s85_s20, %s85_s20 }
  0x1d   :  { %p1528_p10 = scmp.ne.s32.totalorder %s85_s20, %s1527_s21  ;;  %p1533_p12 = scmp.lt.s32.totalorder %s1527_s21, %s1527_s21 }
  0x1f   :  { %p1534_p13 = por %p1533_p12, %p1532_p11 }
  0x21   :  { %p1535_p0 = pnand %p1534_p13, %p1528_p10 }
  0x23   :  { %1538 = shalt.err (!%p1535_p0)
}
  0x24   :  { %s1674_s2 = smov 1024   ;;  %s1675_s22 = smov 64  }
  0x25   :  { %90 = dma.hbm_to_vmem [thread:$0]  %s2082_s7, 32768, %s85_s20, [#allocation12], %s1674_s2, %s1674_s2, %s1675_s22  }
  0x26   :  { %s1676_s25 = smov [#allocation2]   ;;  %s1677_s4 = smov [#allocation7]  }
  0x27   :  { %s31_s26 = sshll.u32 %s1676_s25, 4  ;;  %s53_s27 = sshll.u32 %s1677_s4, 4  ;;  %s32_s26 = int_to_ptr.vmem [resolvable:$true] %s31_s26  ;;  %s54_s27 = int_to_ptr.vmem [resolvable:$true] %s53_s27 }
  0x28   :  { %s1547_s28 = scalar_lea.vmem %s32_s26, 128  ;;  %p1552_p2 = scmp.lt.s32.totalorder %s32_s26, %s32_s26 }
  0x29   :  { %p1548_p1 = scmp.ne.s32.totalorder %s32_s26, %s1547_s28  ;;  %p1553_p3 = scmp.lt.s32.totalorder %s1547_s28, %s1547_s28 }
  0x2b   :  { %p1554_p4 = por %p1553_p3, %p1552_p2 }
  0x2d   :  { %p1555_p5 = pnand %p1554_p4, %p1548_p1 }
  0x2f   :  { %1558 = shalt.err (!%p1555_p5)
}
  0x30   :  { %34 = dma.hbm_to_vmem [thread:$0]  %s2075_s0, 128, %s32_s26, [#allocation3]  }
  0x31   :  { %s1567_s14 = scalar_lea.vmem %s54_s27, 128  ;;  %p1572_p7 = scmp.lt.s32.totalorder %s54_s27, %s54_s27 }
  0x32   :  { %p1568_p6 = scmp.ne.s32.totalorder %s54_s27, %s1567_s14  ;;  %p1573_p8 = scmp.lt.s32.totalorder %s1567_s14, %s1567_s14 }
  0x34   :  { %p1574_p9 = por %p1573_p8, %p1572_p7 }
  0x36   :  { %p1575_p10 = pnand %p1574_p9, %p1568_p6 }
  0x38   :  { %1578 = shalt.err (!%p1575_p10)
}
  0x39   :  { %56 = dma.hbm_to_vmem [thread:$0]  %s2078_s3, 128, %s54_s27, [#allocation6]  }
  0x3a   :  { %s1678_s16 = smov [#allocation10]   ;;  %s1679_s18 = smov [#allocation13]  }
  0x3b   :  { %s75_s17 = sshll.u32 %s1678_s16, 4  ;;  %s97_s19 = sshll.u32 %s1679_s18, 4  ;;  %s76_s17 = int_to_ptr.vmem [resolvable:$true] %s75_s17  ;;  %s98_s19 = int_to_ptr.vmem [resolvable:$true] %s97_s19 }
  0x3c   :  { %s1587_s20 = scalar_lea.vmem %s76_s17, 128  ;;  %p1592_p12 = scmp.lt.s32.totalorder %s76_s17, %s76_s17 }
  0x3d   :  { %p1588_p11 = scmp.ne.s32.totalorder %s76_s17, %s1587_s20  ;;  %p1593_p13 = scmp.lt.s32.totalorder %s1587_s20, %s1587_s20 }
  0x3f   :  { %p1594_p0 = por %p1593_p13, %p1592_p12 }
  0x41   :  { %p1595_p1 = pnand %p1594_p0, %p1588_p11 }
  0x43   :  { %1598 = shalt.err (!%p1595_p1)
}
  0x44   :  { %78 = dma.hbm_to_vmem [thread:$0]  %s2081_s6, 128, %s76_s17, [#allocation9]  }
  0x45   :  { %s1607_s2 = scalar_lea.vmem %s98_s19, 128  ;;  %p1612_p3 = scmp.lt.s32.totalorder %s98_s19, %s98_s19 }
  0x46   :  { %p1608_p2 = scmp.ne.s32.totalorder %s98_s19, %s1607_s2  ;;  %p1613_p4 = scmp.lt.s32.totalorder %s1607_s2, %s1607_s2 }
  0x48   :  { %p1614_p5 = por %p1613_p4, %p1612_p3 }
  0x4a   :  { %p1615_p6 = pnand %p1614_p5, %p1608_p2 }
  0x4c   :  { %1618 = shalt.err (!%p1615_p6)
}
  0x4d   :  { %100 = dma.hbm_to_vmem [thread:$0]  %s2083_s8, 128, %s98_s19, [#allocation12]  }
  0x4e   :  { %1659 = dma.done.wait [#allocation3], 128  }
  0x4f   :  { %1660 = vsyncadd [#allocation3], 4294967168 }
  0x50   :  { %1661 = dma.done.wait [#allocation6], 384  }
  0x51   :  { %1662 = vsyncadd [#allocation6], 4294966912 }
  0x52   :  { %1663 = dma.done.wait [#allocation9], 144  }
  0x53   :  { %1664 = vsyncadd [#allocation9], 4294967152 }
  0x54   :  { %1665 = dma.done.wait [#allocation12], 32896  }
  0x55   :  { %1666 = vsyncadd [#allocation12], 4294934400  ;;  %v1680_v0 = vmov 0.0   ;;  %vm1681_vm0 = vmmov 0   ;;  %vm143_vm1 = vcmask 1046528   ;;  %vm139_vm2 = vcmask 56320  }
  0x56   :  { %1429 = vmatprep.subr.mxu0 %v1680_v0  ;;  %1431 = vmatprep.mubr.msk.f32.mxu0 %vm1681_vm0, %v1680_v0  ;;  %v131_v1 = vld [vmem:[#allocation7] sm:$0x7f]  ;;  %v126_v2 = vld [vmem:[#allocation2] sm:$0xff]  ;;  %v700_v4 = vld [vmem:[#allocation11 + $0x3c0] sm:$0xff]  ;;  %vm292_vm3 = vcmask 261120   ;;  %s1683_s26 = smov [#allocation15]  }
  0x57   :  { %v701_v3 = vld [vmem:[#allocation11 + $0x3c8] sm:$0xff]  ;;  %1430 = vmatpush3.msk.msra.mxu0 %vm143_vm1, %v131_v1  ;;  %v692_v6 = vld [vmem:[#allocation11 + $0x380] sm:$0xff]  ;;  %v242_v44 = vld [vmem:[%s2080_s5 + $0xc0] sm:$0xff]  ;;  %s1360_s4 = sshll.u32 %s1683_s26, 4  ;;  %s1361_s4 = int_to_ptr.vmem [resolvable:$true] %s1360_s4 }
  0x58   :  { %836 = vmatprep.subr.mxu1 %v701_v3  ;;  %v693_v5 = vld [vmem:[#allocation11 + $0x388] sm:$0xff]  ;;  %1432 = vmatmul.mubr.msk.f32.vlgmr.msra.gmra.mxu0 %vm139_vm2, %v126_v2  ;;  %v684_v8 = vld [vmem:[#allocation11 + $0x340] sm:$0xff]  ;;  %v234_v47 = vld [vmem:[%s2080_s5 + $0x80] sm:$0xff] }
  0x59   :  { %837 = vmatpush1.msra.mxu1 %v700_v4  ;;  %v685_v7 = vld [vmem:[#allocation11 + $0x348] sm:$0xff]  ;;  %360 = vmatprep.mubr.f32.mxu0 %v1680_v0  ;;  %v676_v10 = vld [vmem:[#allocation11 + $0x300] sm:$0xff] }
  0x5a   :  { %838 = vmatprep.subr.mxu1 %v693_v5  ;;  %v677_v9 = vld [vmem:[#allocation11 + $0x308] sm:$0xff]  ;;  %v668_v12 = vld [vmem:[#allocation11 + $0x2c0] sm:$0xff] }
  0x5b   :  { %839 = vmatpush1.msra.mxu1 %v692_v6  ;;  %v669_v11 = vld [vmem:[#allocation11 + $0x2c8] sm:$0xff]  ;;  %v660_v14 = vld [vmem:[#allocation11 + $0x280] sm:$0xff] }
  0x5c   :  { %840 = vmatprep.subr.mxu1 %v685_v7  ;;  %v661_v13 = vld [vmem:[#allocation11 + $0x288] sm:$0xff]  ;;  %v652_v16 = vld [vmem:[#allocation11 + $0x240] sm:$0xff] }
  0x5d   :  { %841 = vmatpush1.msra.mxu1 %v684_v8  ;;  %v653_v15 = vld [vmem:[#allocation11 + $0x248] sm:$0xff]  ;;  %v644_v18 = vld [vmem:[#allocation11 + $0x200] sm:$0xff] }
  0x5e   :  { %842 = vmatprep.subr.mxu1 %v677_v9  ;;  %v645_v17 = vld [vmem:[#allocation11 + $0x208] sm:$0xff]  ;;  %v636_v20 = vld [vmem:[#allocation11 + $0x1c0] sm:$0xff] }
  0x5f   :  { %843 = vmatpush1.msra.mxu1 %v676_v10  ;;  %v637_v19 = vld [vmem:[#allocation11 + $0x1c8] sm:$0xff]  ;;  %v628_v22 = vld [vmem:[#allocation11 + $0x180] sm:$0xff]  ;;  %v1799_v10 = vld [vmem:[%s2076_s1] sm:$0xff] }
  0x60   :  { %844 = vmatprep.subr.mxu1 %v669_v11  ;;  %v629_v21 = vld [vmem:[#allocation11 + $0x188] sm:$0xff]  ;;  %v620_v24 = vld [vmem:[#allocation11 + $0x140] sm:$0xff] }
  0x61   :  { %845 = vmatpush1.msra.mxu1 %v668_v12  ;;  %v621_v23 = vld [vmem:[#allocation11 + $0x148] sm:$0xff]  ;;  %v612_v26 = vld [vmem:[#allocation11 + $0x100] sm:$0xff] }
  0x62   :  { %846 = vmatprep.subr.mxu1 %v661_v13  ;;  %v613_v25 = vld [vmem:[#allocation11 + $0x108] sm:$0xff]  ;;  %v1781_v28 = vld [vmem:[%s2076_s1 + $0x8] sm:$0xff] }
  0x63   :  { %847 = vmatpush1.msra.mxu1 %v660_v14  ;;  %v605_v27 = vld [vmem:[#allocation11 + $0xc8] sm:$0xff]  ;;  %v604_v29 = vld [vmem:[#allocation11 + $0xc0] sm:$0xff]  ;;  %900 = vmatprep.mubr.f32.mxu1 %v1781_v28 }
  0x64   :  { %848 = vmatprep.subr.mxu1 %v653_v15  ;;  %v597_v30 = vld [vmem:[#allocation11 + $0x88] sm:$0xff]  ;;  %v596_v31 = vld [vmem:[#allocation11 + $0x80] sm:$0xff] }
  0x65   :  { %849 = vmatpush1.msra.mxu1 %v652_v16  ;;  %v589_v32 = vld [vmem:[#allocation11 + $0x48] sm:$0xff]  ;;  %v588_v33 = vld [vmem:[#allocation11 + $0x40] sm:$0xff]  ;;  %v226_v16 = vld [vmem:[%s2080_s5 + $0x40] sm:$0xff] }
  0x66   :  { %850 = vmatprep.subr.mxu1 %v645_v17  ;;  %v581_v34 = vld [vmem:[#allocation11 + $0x8] sm:$0xff]  ;;  %v580_v35 = vld [vmem:[#allocation11] sm:$0xff] }
  0x67   :  { %851 = vmatpush1.msra.mxu1 %v644_v18  ;;  %v829_v36 = vld [vmem:[#allocation11 + $0x7c8] sm:$0xff]  ;;  %v828_v37 = vld [vmem:[#allocation11 + $0x7c0] sm:$0xff] }
  0x68   :  { %852 = vmatprep.subr.mxu1 %v637_v19  ;;  %v821_v38 = vld [vmem:[#allocation11 + $0x788] sm:$0xff]  ;;  %v820_v39 = vld [vmem:[#allocation11 + $0x780] sm:$0xff] }
  0x69   :  { %853 = vmatpush1.msra.mxu1 %v636_v20  ;;  %v813_v40 = vld [vmem:[#allocation11 + $0x748] sm:$0xff]  ;;  %v812_v41 = vld [vmem:[#allocation11 + $0x740] sm:$0xff]  ;;  %v218_v20 = vld [vmem:[%s2080_s5] sm:$0xff] }
  0x6a   :  { %854 = vmatprep.subr.mxu1 %v629_v21  ;;  %v243_v42 = vld [vmem:[%s2080_s5 + $0xc8] sm:$0xff]  ;;  %v805_v43 = vld [vmem:[#allocation11 + $0x708] sm:$0xff] }
  0x6b   :  { %855 = vmatpush1.msra.mxu1 %v628_v22  ;;  %320 = vmatprep.subr.mxu0 %v243_v42  ;;  %v235_v45 = vld [vmem:[%s2080_s5 + $0x88] sm:$0xff]  ;;  %v797_v48 = vld [vmem:[#allocation11 + $0x6c8] sm:$0xff] }
  0x6c   :  { %856 = vmatprep.subr.mxu1 %v621_v23  ;;  %v804_v46 = vld [vmem:[#allocation11 + $0x700] sm:$0xff]  ;;  %321 = vmatpush1.msra.mxu0 %v242_v44  ;;  %v789_v50 = vld [vmem:[#allocation11 + $0x688] sm:$0xff] }
  0x6d   :  { %857 = vmatpush1.msra.mxu1 %v620_v24  ;;  %322 = vmatprep.subr.mxu0 %v235_v45  ;;  %v796_v49 = vld [vmem:[#allocation11 + $0x6c0] sm:$0xff]  ;;  %v781_v52 = vld [vmem:[#allocation11 + $0x648] sm:$0xff] }
  0x6e   :  { %858 = vmatprep.subr.mxu1 %v613_v25  ;;  %323 = vmatpush1.msra.mxu0 %v234_v47  ;;  %v788_v51 = vld [vmem:[#allocation11 + $0x680] sm:$0xff]  ;;  %v773_v54 = vld [vmem:[#allocation11 + $0x608] sm:$0xff] }
  0x6f   :  { %859 = vmatpush1.msra.mxu1 %v612_v26  ;;  %v780_v53 = vld [vmem:[#allocation11 + $0x640] sm:$0xff]  ;;  %v765_v56 = vld [vmem:[#allocation11 + $0x5c8] sm:$0xff] }
  0x70   :  { %860 = vmatprep.subr.mxu1 %v605_v27  ;;  %v772_v55 = vld [vmem:[#allocation11 + $0x600] sm:$0xff]  ;;  %v757_v58 = vld [vmem:[#allocation11 + $0x588] sm:$0xff] }
  0x71   :  { %861 = vmatpush1.msra.mxu1 %v604_v29  ;;  %v764_v57 = vld [vmem:[#allocation11 + $0x5c0] sm:$0xff]  ;;  %v749_v60 = vld [vmem:[#allocation11 + $0x548] sm:$0xff] }
  0x72   :  { %862 = vmatprep.subr.mxu1 %v597_v30  ;;  %v756_v59 = vld [vmem:[#allocation11 + $0x580] sm:$0xff]  ;;  %v741_v62 = vld [vmem:[#allocation11 + $0x508] sm:$0xff] }
  0x73   :  { %863 = vmatpush1.msra.mxu1 %v596_v31  ;;  %v748_v61 = vld [vmem:[#allocation11 + $0x540] sm:$0xff]  ;;  %v733_v1 = vld [vmem:[#allocation11 + $0x4c8] sm:$0xff] }
  0x74   :  { %864 = vmatprep.subr.mxu1 %v589_v32  ;;  %v740_v63 = vld [vmem:[#allocation11 + $0x500] sm:$0xff]  ;;  %v725_v3 = vld [vmem:[#allocation11 + $0x488] sm:$0xff] }
  0x75   :  { %865 = vmatpush1.msra.mxu1 %v588_v33  ;;  %v732_v2 = vld [vmem:[#allocation11 + $0x4c0] sm:$0xff]  ;;  %v717_v5 = vld [vmem:[#allocation11 + $0x448] sm:$0xff] }
  0x76   :  { %866 = vmatprep.subr.mxu1 %v581_v34  ;;  %v724_v4 = vld [vmem:[#allocation11 + $0x480] sm:$0xff]  ;;  %v709_v7 = vld [vmem:[#allocation11 + $0x408] sm:$0xff] }
  0x77   :  { %867 = vmatpush1.msra.mxu1 %v580_v35  ;;  %v716_v6 = vld [vmem:[#allocation11 + $0x440] sm:$0xff]  ;;  %v705_v9 = vld [vmem:[#allocation11 + $0x3e8] sm:$0xff] }
  0x78   :  { %868 = vmatprep.subr.mxu1 %v829_v36  ;;  %v708_v8 = vld [vmem:[#allocation11 + $0x400] sm:$0xff]  ;;  %v697_v12 = vld [vmem:[#allocation11 + $0x3a8] sm:$0xff] }
  0x79   :  { %869 = vmatpush2.msra.mxu1 %v828_v37  ;;  %v704_v11 = vld [vmem:[#allocation11 + $0x3e0] sm:$0xff]  ;;  %v689_v15 = vld [vmem:[#allocation11 + $0x368] sm:$0xff] }
  0x7a   :  { %870 = vmatprep.subr.mxu1 %v821_v38  ;;  %v696_v13 = vld [vmem:[#allocation11 + $0x3a0] sm:$0xff]  ;;  %v681_v19 = vld [vmem:[#allocation11 + $0x328] sm:$0xff] }
  0x7b   :  { %871 = vmatpush2.msra.mxu1 %v820_v39  ;;  %v227_v14 = vld [vmem:[%s2080_s5 + $0x48] sm:$0xff]  ;;  %v245_v22 = vld [vmem:[%s2080_s5 + $0xd8] sm:$0xff] }
  0x7c   :  { %872 = vmatprep.subr.mxu1 %v813_v40  ;;  %324 = vmatprep.subr.mxu0 %v227_v14  ;;  %v688_v17 = vld [vmem:[#allocation11 + $0x360] sm:$0xff]  ;;  %v673_v23 = vld [vmem:[#allocation11 + $0x2e8] sm:$0xff] }
  0x7d   :  { %873 = vmatpush2.msra.mxu1 %v812_v41  ;;  %325 = vmatpush1.msra.mxu0 %v226_v16  ;;  %v219_v18 = vld [vmem:[%s2080_s5 + $0x8] sm:$0xff]  ;;  %v665_v25 = vld [vmem:[#allocation11 + $0x2a8] sm:$0xff] }
  0x7e   :  { %874 = vmatprep.subr.mxu1 %v805_v43  ;;  %326 = vmatprep.subr.mxu0 %v219_v18  ;;  %v680_v21 = vld [vmem:[#allocation11 + $0x320] sm:$0xff]  ;;  %v657_v27 = vld [vmem:[#allocation11 + $0x268] sm:$0xff]  ;;  %v1378_v18 = vld [vmem:[#allocation8] ss:$0 sm:$0xff] }
  0x7f   :  { %875 = vmatpush2.msra.mxu1 %v804_v46  ;;  %327 = vmatpush1.msra.mxu0 %v218_v20  ;;  %v672_v24 = vld [vmem:[#allocation11 + $0x2e0] sm:$0xff]  ;;  %v649_v30 = vld [vmem:[#allocation11 + $0x228] sm:$0xff] }
  0x80   :  { %876 = vmatprep.subr.mxu1 %v797_v48  ;;  %391 = vmatprep.subr.mxu0 %v245_v22  ;;  %v664_v26 = vld [vmem:[#allocation11 + $0x2a0] sm:$0xff]  ;;  %v641_v32 = vld [vmem:[#allocation11 + $0x1e8] sm:$0xff] }
  0x81   :  { %877 = vmatpush2.msra.mxu1 %v796_v49  ;;  %v656_v29 = vld [vmem:[#allocation11 + $0x260] sm:$0xff]  ;;  %v633_v34 = vld [vmem:[#allocation11 + $0x1a8] sm:$0xff] }
  0x82   :  { %878 = vmatprep.subr.mxu1 %v789_v50  ;;  %v648_v31 = vld [vmem:[#allocation11 + $0x220] sm:$0xff]  ;;  %v625_v36 = vld [vmem:[#allocation11 + $0x168] sm:$0xff] }
  0x83   :  { %879 = vmatpush2.msra.mxu1 %v788_v51  ;;  %v640_v33 = vld [vmem:[#allocation11 + $0x1e0] sm:$0xff]  ;;  %v617_v38 = vld [vmem:[#allocation11 + $0x128] sm:$0xff] }
  0x84   :  { %880 = vmatprep.subr.mxu1 %v781_v52  ;;  %v632_v35 = vld [vmem:[#allocation11 + $0x1a0] sm:$0xff]  ;;  %v609_v40 = vld [vmem:[#allocation11 + $0xe8] sm:$0xff] }
  0x85   :  { %881 = vmatpush2.msra.mxu1 %v780_v53  ;;  %v624_v37 = vld [vmem:[#allocation11 + $0x160] sm:$0xff]  ;;  %v601_v42 = vld [vmem:[#allocation11 + $0xa8] sm:$0xff] }
  0x86   :  { %882 = vmatprep.subr.mxu1 %v773_v54  ;;  %v616_v39 = vld [vmem:[#allocation11 + $0x120] sm:$0xff]  ;;  %v593_v44 = vld [vmem:[#allocation11 + $0x68] sm:$0xff] }
  0x87   :  { %883 = vmatpush2.msra.mxu1 %v772_v55  ;;  %v608_v41 = vld [vmem:[#allocation11 + $0xe0] sm:$0xff]  ;;  %v585_v46 = vld [vmem:[#allocation11 + $0x28] sm:$0xff] }
  0x88   :  { %884 = vmatprep.subr.mxu1 %v765_v56  ;;  %v600_v43 = vld [vmem:[#allocation11 + $0xa0] sm:$0xff]  ;;  %v833_v48 = vld [vmem:[#allocation11 + $0x7e8] sm:$0xff] }
  0x89   :  { %885 = vmatpush2.msra.mxu1 %v764_v57  ;;  %v592_v45 = vld [vmem:[#allocation11 + $0x60] sm:$0xff]  ;;  %v825_v50 = vld [vmem:[#allocation11 + $0x7a8] sm:$0xff] }
  0x8a   :  { %886 = vmatprep.subr.mxu1 %v757_v58  ;;  %v584_v47 = vld [vmem:[#allocation11 + $0x20] sm:$0xff]  ;;  %v817_v52 = vld [vmem:[#allocation11 + $0x768] sm:$0xff] }
  0x8b   :  { %887 = vmatpush2.msra.mxu1 %v756_v59  ;;  %v832_v49 = vld [vmem:[#allocation11 + $0x7e0] sm:$0xff]  ;;  %v809_v54 = vld [vmem:[#allocation11 + $0x728] sm:$0xff] }
  0x8c   :  { %888 = vmatprep.subr.mxu1 %v749_v60  ;;  %v824_v51 = vld [vmem:[#allocation11 + $0x7a0] sm:$0xff]  ;;  %v801_v56 = vld [vmem:[#allocation11 + $0x6e8] sm:$0xff] }
  0x8d   :  { %889 = vmatpush2.msra.mxu1 %v748_v61  ;;  %v816_v53 = vld [vmem:[#allocation11 + $0x760] sm:$0xff]  ;;  %v793_v58 = vld [vmem:[#allocation11 + $0x6a8] sm:$0xff] }
  0x8e   :  { %890 = vmatprep.subr.mxu1 %v741_v62  ;;  %v808_v55 = vld [vmem:[#allocation11 + $0x720] sm:$0xff]  ;;  %v785_v60 = vld [vmem:[#allocation11 + $0x668] sm:$0xff] }
  0x8f   :  { %891 = vmatpush2.msra.mxu1 %v740_v63  ;;  %v800_v57 = vld [vmem:[#allocation11 + $0x6e0] sm:$0xff]  ;;  %v777_v62 = vld [vmem:[#allocation11 + $0x628] sm:$0xff] }
  0x90   :  { %892 = vmatprep.subr.mxu1 %v733_v1  ;;  %v792_v59 = vld [vmem:[#allocation11 + $0x6a0] sm:$0xff]  ;;  %v769_v1 = vld [vmem:[#allocation11 + $0x5e8] sm:$0xff] }
  0x91   :  { %893 = vmatpush2.msra.mxu1 %v732_v2  ;;  %v784_v61 = vld [vmem:[#allocation11 + $0x660] sm:$0xff]  ;;  %v721_v14 = vld [vmem:[#allocation11 + $0x468] sm:$0xff] }
  0x92   :  { %894 = vmatprep.subr.mxu1 %v725_v3  ;;  %v776_v63 = vld [vmem:[#allocation11 + $0x620] sm:$0xff]  ;;  %v761_v3 = vld [vmem:[#allocation11 + $0x5a8] sm:$0xff] }
  0x93   :  { %895 = vmatpush2.msra.mxu1 %v724_v4  ;;  %v768_v2 = vld [vmem:[#allocation11 + $0x5e0] sm:$0xff]  ;;  %v713_v16 = vld [vmem:[#allocation11 + $0x428] sm:$0xff] }
  0x94   :  { %896 = vmatprep.subr.mxu1 %v717_v5  ;;  %v760_v4 = vld [vmem:[#allocation11 + $0x5a0] sm:$0xff]  ;;  %v753_v5 = vld [vmem:[#allocation11 + $0x568] sm:$0xff] }
  0x95   :  { %897 = vmatpush2.msra.mxu1 %v716_v6  ;;  %v752_v6 = vld [vmem:[#allocation11 + $0x560] sm:$0xff] }
  0x96   :  { %898 = vmatprep.subr.mxu1 %v709_v7  ;;  %v745_v7 = vld [vmem:[#allocation11 + $0x528] sm:$0xff] }
  0x97   :  { %899 = vmatpush2.msra.mxu1 %v708_v8  ;;  %v744_v8 = vld [vmem:[#allocation11 + $0x520] sm:$0xff] }
  0x98   :  { %978 = vmatprep.subr.mxu1 %v705_v9  ;;  %901 = vmatmul.mubr.f32.vlgmr.msra.gmra.mxu1 %v1799_v10  ;;  %v737_v9 = vld [vmem:[#allocation11 + $0x4e8] sm:$0xff] }
  0x99   :  { %979 = vmatpush1.msra.mxu1 %v704_v11  ;;  %1042 = vmatprep.mubr.f32.mxu1 %v1781_v28  ;;  %v736_v11 = vld [vmem:[#allocation11 + $0x4e0] sm:$0xff] }
  0x9a   :  { %980 = vmatprep.subr.mxu1 %v697_v12  ;;  %v729_v12 = vld [vmem:[#allocation11 + $0x4a8] sm:$0xff] }
  0x9b   :  { %981 = vmatpush1.msra.mxu1 %v696_v13  ;;  %v728_v13 = vld [vmem:[#allocation11 + $0x4a0] sm:$0xff] }
  0x9c   :  { %982 = vmatprep.subr.mxu1 %v689_v15  ;;  %v720_v15 = vld [vmem:[#allocation11 + $0x460] sm:$0xff] }
  0x9d   :  { %983 = vmatpush1.msra.mxu1 %v688_v17  ;;  %v712_v17 = vld [vmem:[#allocation11 + $0x420] sm:$0xff] }
  0x9e   :  { %984 = vmatprep.subr.mxu1 %v681_v19 }
  0x9f   :  { %985 = vmatpush1.msra.mxu1 %v680_v21 }
  0xa0   :  { %986 = vmatprep.subr.mxu1 %v673_v23  ;;  %v244_v23 = vld [vmem:[%s2080_s5 + $0xd0] sm:$0xff] }
  0xa1   :  { %987 = vmatpush1.msra.mxu1 %v672_v24  ;;  %v237_v24 = vld [vmem:[%s2080_s5 + $0x98] sm:$0xff] }
  0xa2   :  { %988 = vmatprep.subr.mxu1 %v665_v25  ;;  %v236_v25 = vld [vmem:[%s2080_s5 + $0x90] sm:$0xff] }
  0xa3   :  { %989 = vmatpush1.msra.mxu1 %v664_v26  ;;  %v229_v26 = vld [vmem:[%s2080_s5 + $0x58] sm:$0xff] }
  0xa4   :  { %990 = vmatprep.subr.mxu1 %v657_v27  ;;  %v228_v27 = vld [vmem:[%s2080_s5 + $0x50] sm:$0xff] }
  0xa5   :  { %991 = vmatpush1.msra.mxu1 %v656_v29  ;;  %v221_v29 = vld [vmem:[%s2080_s5 + $0x18] sm:$0xff] }
  0xa6   :  { %992 = vmatprep.subr.mxu1 %v649_v30  ;;  %v220_v30 = vld [vmem:[%s2080_s5 + $0x10] sm:$0xff] }
  0xa7   :  { %993 = vmatpush1.msra.mxu1 %v648_v31  ;;  %v247_v31 = vld [vmem:[%s2080_s5 + $0xe8] sm:$0xff] }
  0xa8   :  { %994 = vmatprep.subr.mxu1 %v641_v32  ;;  %v246_v32 = vld [vmem:[%s2080_s5 + $0xe0] sm:$0xff] }
  0xa9   :  { %995 = vmatpush1.msra.mxu1 %v640_v33  ;;  %v239_v33 = vld [vmem:[%s2080_s5 + $0xa8] sm:$0xff] }
  0xaa   :  { %996 = vmatprep.subr.mxu1 %v633_v34  ;;  %v238_v34 = vld [vmem:[%s2080_s5 + $0xa0] sm:$0xff] }
  0xab   :  { %997 = vmatpush1.msra.mxu1 %v632_v35  ;;  %v231_v35 = vld [vmem:[%s2080_s5 + $0x68] sm:$0xff] }
  0xac   :  { %998 = vmatprep.subr.mxu1 %v625_v36  ;;  %v230_v36 = vld [vmem:[%s2080_s5 + $0x60] sm:$0xff] }
  0xad   :  { %999 = vmatpush1.msra.mxu1 %v624_v37  ;;  %v223_v37 = vld [vmem:[%s2080_s5 + $0x28] sm:$0xff] }
  0xae   :  { %1000 = vmatprep.subr.mxu1 %v617_v38  ;;  %v222_v38 = vld [vmem:[%s2080_s5 + $0x20] sm:$0xff] }
  0xaf   :  { %1001 = vmatpush1.msra.mxu1 %v616_v39  ;;  %v249_v39 = vld [vmem:[%s2080_s5 + $0xf8] sm:$0xff] }
  0xb0   :  { %1002 = vmatprep.subr.mxu1 %v609_v40  ;;  %v248_v40 = vld [vmem:[%s2080_s5 + $0xf0] sm:$0xff] }
  0xb1   :  { %1003 = vmatpush1.msra.mxu1 %v608_v41  ;;  %v241_v41 = vld [vmem:[%s2080_s5 + $0xb8] sm:$0xff] }
  0xb2   :  { %1004 = vmatprep.subr.mxu1 %v601_v42  ;;  %v240_v42 = vld [vmem:[%s2080_s5 + $0xb0] sm:$0xff] }
  0xb3   :  { %1005 = vmatpush1.msra.mxu1 %v600_v43  ;;  %v233_v43 = vld [vmem:[%s2080_s5 + $0x78] sm:$0xff] }
  0xb4   :  { %1006 = vmatprep.subr.mxu1 %v593_v44  ;;  %v232_v44 = vld [vmem:[%s2080_s5 + $0x70] sm:$0xff] }
  0xb5   :  { %1007 = vmatpush1.msra.mxu1 %v592_v45  ;;  %v225_v45 = vld [vmem:[%s2080_s5 + $0x38] sm:$0xff] }
  0xb6   :  { %1008 = vmatprep.subr.mxu1 %v585_v46  ;;  %v224_v46 = vld [vmem:[%s2080_s5 + $0x30] sm:$0xff] }
  0xb7   :  { %1009 = vmatpush1.msra.mxu1 %v584_v47  ;;  %v703_v47 = vld [vmem:[#allocation11 + $0x3d8] sm:$0xff] }
  0xb8   :  { %1010 = vmatprep.subr.mxu1 %v833_v48  ;;  %v702_v48 = vld [vmem:[#allocation11 + $0x3d0] sm:$0xff] }
  0xb9   :  { %1011 = vmatpush2.msra.mxu1 %v832_v49  ;;  %v694_v49 = vld [vmem:[#allocation11 + $0x390] sm:$0xff] }
  0xba   :  { %1012 = vmatprep.subr.mxu1 %v825_v50  ;;  %v687_v50 = vld [vmem:[#allocation11 + $0x358] sm:$0xff] }
  0xbb   :  { %1013 = vmatpush2.msra.mxu1 %v824_v51  ;;  %v686_v51 = vld [vmem:[#allocation11 + $0x350] sm:$0xff] }
  0xbc   :  { %1014 = vmatprep.subr.mxu1 %v817_v52  ;;  %v679_v52 = vld [vmem:[#allocation11 + $0x318] sm:$0xff] }
  0xbd   :  { %1015 = vmatpush2.msra.mxu1 %v816_v53  ;;  %v678_v53 = vld [vmem:[#allocation11 + $0x310] sm:$0xff] }
  0xbe   :  { %1016 = vmatprep.subr.mxu1 %v809_v54  ;;  %v671_v54 = vld [vmem:[#allocation11 + $0x2d8] sm:$0xff] }
  0xbf   :  { %1017 = vmatpush2.msra.mxu1 %v808_v55  ;;  %v670_v55 = vld [vmem:[#allocation11 + $0x2d0] sm:$0xff] }
  0xc0   :  { %1018 = vmatprep.subr.mxu1 %v801_v56  ;;  %v663_v56 = vld [vmem:[#allocation11 + $0x298] sm:$0xff] }
  0xc1   :  { %1019 = vmatpush2.msra.mxu1 %v800_v57  ;;  %v662_v57 = vld [vmem:[#allocation11 + $0x290] sm:$0xff] }
  0xc2   :  { %1020 = vmatprep.subr.mxu1 %v793_v58  ;;  %v655_v58 = vld [vmem:[#allocation11 + $0x258] sm:$0xff] }
  0xc3   :  { %1021 = vmatpush2.msra.mxu1 %v792_v59  ;;  %v654_v59 = vld [vmem:[#allocation11 + $0x250] sm:$0xff] }
  0xc4   :  { %1022 = vmatprep.subr.mxu1 %v785_v60  ;;  %v647_v60 = vld [vmem:[#allocation11 + $0x218] sm:$0xff] }
  0xc5   :  { %1023 = vmatpush2.msra.mxu1 %v784_v61  ;;  %v646_v61 = vld [vmem:[#allocation11 + $0x210] sm:$0xff] }
  0xc6   :  { %1024 = vmatprep.subr.mxu1 %v777_v62  ;;  %v639_v62 = vld [vmem:[#allocation11 + $0x1d8] sm:$0xff] }
  0xc7   :  { %1025 = vmatpush2.msra.mxu1 %v776_v63  ;;  %v638_v63 = vld [vmem:[#allocation11 + $0x1d0] sm:$0xff] }
  0xc8   :  { %1026 = vmatprep.subr.mxu1 %v769_v1  ;;  %v631_v1 = vld [vmem:[#allocation11 + $0x198] sm:$0xff] }
  0xc9   :  { %1027 = vmatpush2.msra.mxu1 %v768_v2  ;;  %v630_v2 = vld [vmem:[#allocation11 + $0x190] sm:$0xff] }
  0xca   :  { %1028 = vmatprep.subr.mxu1 %v761_v3  ;;  %v623_v3 = vld [vmem:[#allocation11 + $0x158] sm:$0xff] }
  0xcb   :  { %1029 = vmatpush2.msra.mxu1 %v760_v4  ;;  %v622_v4 = vld [vmem:[#allocation11 + $0x150] sm:$0xff] }
  0xcc   :  { %1030 = vmatprep.subr.mxu1 %v753_v5  ;;  %v615_v5 = vld [vmem:[#allocation11 + $0x118] sm:$0xff] }
  0xcd   :  { %1031 = vmatpush2.msra.mxu1 %v752_v6  ;;  %v614_v6 = vld [vmem:[#allocation11 + $0x110] sm:$0xff] }
  0xce   :  { %1032 = vmatprep.subr.mxu1 %v745_v7  ;;  %v607_v7 = vld [vmem:[#allocation11 + $0xd8] sm:$0xff] }
  0xcf   :  { %1033 = vmatpush2.msra.mxu1 %v744_v8  ;;  %v606_v8 = vld [vmem:[#allocation11 + $0xd0] sm:$0xff] }
  0xd0   :  { %1034 = vmatprep.subr.mxu1 %v737_v9  ;;  %v599_v9 = vld [vmem:[#allocation11 + $0x98] sm:$0xff] }
  0xd1   :  { %1035 = vmatpush2.msra.mxu1 %v736_v11  ;;  %v598_v11 = vld [vmem:[#allocation11 + $0x90] sm:$0xff] }
  0xd2   :  { %1036 = vmatprep.subr.mxu1 %v729_v12  ;;  %v591_v12 = vld [vmem:[#allocation11 + $0x58] sm:$0xff] }
  0xd3   :  { %1037 = vmatpush2.msra.mxu1 %v728_v13  ;;  %v590_v13 = vld [vmem:[#allocation11 + $0x50] sm:$0xff] }
  0xd4   :  { %1038 = vmatprep.subr.mxu1 %v721_v14  ;;  %v583_v14 = vld [vmem:[#allocation11 + $0x18] sm:$0xff] }
  0xd5   :  { %1039 = vmatpush2.msra.mxu1 %v720_v15  ;;  %v582_v15 = vld [vmem:[#allocation11 + $0x10] sm:$0xff] }
  0xd6   :  { %1040 = vmatprep.subr.mxu1 %v713_v16  ;;  %v831_v16 = vld [vmem:[#allocation11 + $0x7d8] sm:$0xff] }
  0xd7   :  { %1041 = vmatpush2.msra.mxu1 %v712_v17  ;;  %v830_v17 = vld [vmem:[#allocation11 + $0x7d0] sm:$0xff] }
  0xd8   :  { %1043 = vmatmul.mubr.f32.vlgmr.msra.gmra.mxu1 %v1799_v10 }
 0x118   :  { %v213_v19 = vpop.f32.mrf.mxu0 }
 0x119   :  { %v214_v20 = vadd.f32 %v1378_v18, %v213_v19  ;;  %v823_v18 = vld [vmem:[#allocation11 + $0x798] sm:$0xff]  ;;  %v822_v19 = vld [vmem:[#allocation11 + $0x790] sm:$0xff] }
 0x11a   :  { %v1433_v21 = vpop.f32.mrf.mxu0 }
 0x11b   :  { %v217_v22 = vmax.f32 %v214_v20, 0.0  ;;  %v815_v20 = vld [vmem:[#allocation11 + $0x758] sm:$0xff]  ;;  %v814_v21 = vld [vmem:[#allocation11 + $0x750] sm:$0xff] }
 0x11d   :  { %1381 = vmatmul.mubr.msk.f32.vlgmr.msra.gmra.mxu0 %vm292_vm3, %v217_v22 }
 0x11e   :  { %392 = vmatpush1.msra.mxu0 %v244_v23  ;;  %431 = vmatprep.mubr.f32.mxu0 %v1680_v0  ;;  %v806_v23 = vld [vmem:[#allocation11 + $0x710] sm:$0xff] }
 0x11f   :  { %393 = vmatprep.subr.mxu0 %v237_v24  ;;  %v799_v24 = vld [vmem:[#allocation11 + $0x6d8] sm:$0xff] }
 0x120   :  { %394 = vmatpush1.msra.mxu0 %v236_v25  ;;  %v798_v25 = vld [vmem:[#allocation11 + $0x6d0] sm:$0xff] }
 0x121   :  { %395 = vmatprep.subr.mxu0 %v229_v26  ;;  %v791_v26 = vld [vmem:[#allocation11 + $0x698] sm:$0xff] }
 0x122   :  { %396 = vmatpush1.msra.mxu0 %v228_v27  ;;  %v790_v27 = vld [vmem:[#allocation11 + $0x690] sm:$0xff] }
 0x123   :  { %397 = vmatprep.subr.mxu0 %v221_v29  ;;  %v783_v29 = vld [vmem:[#allocation11 + $0x658] sm:$0xff] }
 0x124   :  { %398 = vmatpush1.msra.mxu0 %v220_v30  ;;  %v782_v30 = vld [vmem:[#allocation11 + $0x650] sm:$0xff] }
 0x125   :  { %1382 = vmatmul.mubr.msk.f32.vlgmr.msra.gmra.mxu0 %vm292_vm3, %v217_v22  ;;  %462 = vmatprep.subr.mxu0 %v247_v31  ;;  %v775_v31 = vld [vmem:[#allocation11 + $0x618] sm:$0xff] }
 0x126   :  { %463 = vmatpush1.msra.mxu0 %v246_v32  ;;  %502 = vmatprep.mubr.f32.mxu0 %v1680_v0  ;;  %v774_v32 = vld [vmem:[#allocation11 + $0x610] sm:$0xff] }
 0x127   :  { %464 = vmatprep.subr.mxu0 %v239_v33  ;;  %v767_v33 = vld [vmem:[#allocation11 + $0x5d8] sm:$0xff] }
 0x128   :  { %465 = vmatpush1.msra.mxu0 %v238_v34  ;;  %v766_v34 = vld [vmem:[#allocation11 + $0x5d0] sm:$0xff] }
 0x129   :  { %466 = vmatprep.subr.mxu0 %v231_v35  ;;  %v759_v35 = vld [vmem:[#allocation11 + $0x598] sm:$0xff] }
 0x12a   :  { %467 = vmatpush1.msra.mxu0 %v230_v36  ;;  %v758_v36 = vld [vmem:[#allocation11 + $0x590] sm:$0xff] }
 0x12b   :  { %468 = vmatprep.subr.mxu0 %v223_v37  ;;  %v751_v37 = vld [vmem:[#allocation11 + $0x558] sm:$0xff] }
 0x12c   :  { %469 = vmatpush1.msra.mxu0 %v222_v38  ;;  %v750_v38 = vld [vmem:[#allocation11 + $0x550] sm:$0xff] }
 0x12d   :  { %1383 = vmatmul.mubr.msk.f32.vlgmr.msra.gmra.mxu0 %vm292_vm3, %v217_v22  ;;  %533 = vmatprep.subr.mxu0 %v249_v39  ;;  %v743_v39 = vld [vmem:[#allocation11 + $0x518] sm:$0xff] }
 0x12e   :  { %534 = vmatpush1.msra.mxu0 %v248_v40  ;;  %573 = vmatprep.mubr.f32.mxu0 %v1680_v0  ;;  %v695_v0 = vld [vmem:[#allocation11 + $0x398] sm:$0xff]  ;;  %v742_v40 = vld [vmem:[#allocation11 + $0x510] sm:$0xff] }
 0x12f   :  { %535 = vmatprep.subr.mxu0 %v241_v41  ;;  %v735_v41 = vld [vmem:[#allocation11 + $0x4d8] sm:$0xff] }
 0x130   :  { %536 = vmatpush1.msra.mxu0 %v240_v42  ;;  %v734_v42 = vld [vmem:[#allocation11 + $0x4d0] sm:$0xff] }
 0x131   :  { %537 = vmatprep.subr.mxu0 %v233_v43  ;;  %v727_v43 = vld [vmem:[#allocation11 + $0x498] sm:$0xff] }
 0x132   :  { %538 = vmatpush1.msra.mxu0 %v232_v44  ;;  %v726_v44 = vld [vmem:[#allocation11 + $0x490] sm:$0xff] }
 0x133   :  { %539 = vmatprep.subr.mxu0 %v225_v45  ;;  %v252_v45 = vlaneseq }
 0x134   :  { %540 = vmatpush1.msra.mxu0 %v224_v46  ;;  %v719_v46 = vld [vmem:[#allocation11 + $0x458] sm:$0xff] }
 0x135   :  { %1384 = vmatmul.mubr.msk.f32.vlgmr.msra.gmra.mxu0 %vm292_vm3, %v217_v22  ;;  %907 = vmatprep.subr.mxu0 %v703_v47  ;;  %v807_v22 = vld [vmem:[#allocation11 + $0x718] sm:$0xff]  ;;  %v718_v47 = vld [vmem:[#allocation11 + $0x450] sm:$0xff] }
 0x136   :  { %908 = vmatpush1.msra.mxu0 %v702_v48  ;;  %971 = vmatprep.mubr.f32.mxu0 %v1781_v28  ;;  %v711_v48 = vld [vmem:[#allocation11 + $0x418] sm:$0xff] }
 0x137   :  { %909 = vmatprep.subr.mxu0 %v695_v0  ;;  %v710_v0 = vld [vmem:[#allocation11 + $0x410] sm:$0xff] }
 0x138   :  { %910 = vmatpush1.msra.mxu0 %v694_v49  ;;  %v1896_v49 = vshrl.u32 %v252_v45, 7  ;;  %v755_v45 = vld [vmem:[#allocation11 + $0x578] sm:$0xff] }
 0x139   :  { %911 = vmatprep.subr.mxu0 %v687_v50  ;;  %v707_v50 = vld [vmem:[#allocation11 + $0x3f8] sm:$0xff] }
 0x13a   :  { %912 = vmatpush1.msra.mxu0 %v686_v51  ;;  %v706_v51 = vld [vmem:[#allocation11 + $0x3f0] sm:$0xff] }
 0x13b   :  { %913 = vmatprep.subr.mxu0 %v679_v52  ;;  %v278_v52 = vsub.s32 6, %v1896_v49 }
 0x13c   :  { %914 = vmatpush1.msra.mxu0 %v678_v53  ;;  %v699_v53 = vld [vmem:[#allocation11 + $0x3b8] sm:$0xff] }
 0x13d   :  { %915 = vmatprep.subr.mxu0 %v671_v54  ;;  %v1899_v54 = vld [vmem:[#allocation10] sm:$0xff] }
 0x13e   :  { %916 = vmatpush1.msra.mxu0 %v670_v55  ;;  %v698_v55 = vld [vmem:[#allocation11 + $0x3b0] sm:$0xff] }
 0x13f   :  { %917 = vmatprep.subr.mxu0 %v663_v56  ;;  %v1905_v56 = vrot.slane %v1899_v54, %v278_v52 }
 0x140   :  { %918 = vmatpush1.msra.mxu0 %v662_v57  ;;  %v282_v57 = vsub.s32 7, %v1896_v49 }
 0x141   :  { %919 = vmatprep.subr.mxu0 %v655_v58  ;;  %v691_v58 = vld [vmem:[#allocation11 + $0x378] sm:$0xff] }
 0x142   :  { %920 = vmatpush1.msra.mxu0 %v654_v59  ;;  %v690_v59 = vld [vmem:[#allocation11 + $0x370] sm:$0xff] }
 0x143   :  { %921 = vmatprep.subr.mxu0 %v647_v60  ;;  %v1912_v60 = vrot.slane %v1899_v54, %v282_v57 }
 0x144   :  { %922 = vmatpush1.msra.mxu0 %v646_v61  ;;  %v683_v61 = vld [vmem:[#allocation11 + $0x338] sm:$0xff] }
 0x145   :  { %923 = vmatprep.subr.mxu0 %v639_v62  ;;  %v682_v62 = vld [vmem:[#allocation11 + $0x330] sm:$0xff] }
 0x146   :  { %924 = vmatpush1.msra.mxu0 %v638_v63  ;;  %v675_v63 = vld [vmem:[#allocation11 + $0x2f8] sm:$0xff] }
 0x147   :  { %925 = vmatprep.subr.mxu0 %v631_v1  ;;  %v674_v1 = vld [vmem:[#allocation11 + $0x2f0] sm:$0xff] }
 0x148   :  { %926 = vmatpush1.msra.mxu0 %v630_v2  ;;  %v667_v2 = vld [vmem:[#allocation11 + $0x2b8] sm:$0xff] }
 0x149   :  { %927 = vmatprep.subr.mxu0 %v623_v3  ;;  %v666_v3 = vld [vmem:[#allocation11 + $0x2b0] sm:$0xff] }
 0x14a   :  { %928 = vmatpush1.msra.mxu0 %v622_v4  ;;  %v658_v4 = vld [vmem:[#allocation11 + $0x270] sm:$0xff] }
 0x14b   :  { %929 = vmatprep.subr.mxu0 %v615_v5  ;;  %v651_v5 = vld [vmem:[#allocation11 + $0x238] sm:$0xff] }
 0x14c   :  { %930 = vmatpush1.msra.mxu0 %v614_v6  ;;  %v650_v6 = vld [vmem:[#allocation11 + $0x230] sm:$0xff] }
 0x14d   :  { %931 = vmatprep.subr.mxu0 %v607_v7  ;;  %v643_v7 = vld [vmem:[#allocation11 + $0x1f8] sm:$0xff] }
 0x14e   :  { %932 = vmatpush1.msra.mxu0 %v606_v8  ;;  %v642_v8 = vld [vmem:[#allocation11 + $0x1f0] sm:$0xff] }
 0x14f   :  { %933 = vmatprep.subr.mxu0 %v599_v9  ;;  %v635_v9 = vld [vmem:[#allocation11 + $0x1b8] sm:$0xff] }
 0x150   :  { %934 = vmatpush1.msra.mxu0 %v598_v11  ;;  %v634_v11 = vld [vmem:[#allocation11 + $0x1b0] sm:$0xff] }
 0x151   :  { %935 = vmatprep.subr.mxu0 %v591_v12  ;;  %v627_v12 = vld [vmem:[#allocation11 + $0x178] sm:$0xff] }
 0x152   :  { %936 = vmatpush1.msra.mxu0 %v590_v13  ;;  %v626_v13 = vld [vmem:[#allocation11 + $0x170] sm:$0xff] }
 0x153   :  { %937 = vmatprep.subr.mxu0 %v583_v14  ;;  %v619_v14 = vld [vmem:[#allocation11 + $0x138] sm:$0xff] }
 0x154   :  { %938 = vmatpush1.msra.mxu0 %v582_v15  ;;  %v618_v15 = vld [vmem:[#allocation11 + $0x130] sm:$0xff] }
 0x155   :  { %939 = vmatprep.subr.mxu0 %v831_v16  ;;  %v611_v16 = vld [vmem:[#allocation11 + $0xf8] sm:$0xff] }
 0x156   :  { %940 = vmatpush2.msra.mxu0 %v830_v17  ;;  %v610_v17 = vld [vmem:[#allocation11 + $0xf0] sm:$0xff] }
 0x157   :  { %941 = vmatprep.subr.mxu0 %v823_v18  ;;  %v603_v18 = vld [vmem:[#allocation11 + $0xb8] sm:$0xff] }
 0x158   :  { %942 = vmatpush2.msra.mxu0 %v822_v19  ;;  %v602_v19 = vld [vmem:[#allocation11 + $0xb0] sm:$0xff] }
 0x159   :  { %943 = vmatprep.subr.mxu0 %v815_v20  ;;  %v595_v20 = vld [vmem:[#allocation11 + $0x78] sm:$0xff] }
 0x15a   :  { %944 = vmatpush2.msra.mxu0 %v814_v21  ;;  %v594_v21 = vld [vmem:[#allocation11 + $0x70] sm:$0xff] }
 0x15b   :  { %945 = vmatprep.subr.mxu0 %v807_v22  ;;  %v587_v22 = vld [vmem:[#allocation11 + $0x38] sm:$0xff] }
 0x15c   :  { %946 = vmatpush2.msra.mxu0 %v806_v23  ;;  %v586_v23 = vld [vmem:[#allocation11 + $0x30] sm:$0xff] }
 0x15d   :  { %947 = vmatprep.subr.mxu0 %v799_v24  ;;  %v835_v24 = vld [vmem:[#allocation11 + $0x7f8] sm:$0xff] }
 0x15e   :  { %948 = vmatpush2.msra.mxu0 %v798_v25  ;;  %v834_v25 = vld [vmem:[#allocation11 + $0x7f0] sm:$0xff] }
 0x15f   :  { %949 = vmatprep.subr.mxu0 %v791_v26  ;;  %v827_v26 = vld [vmem:[#allocation11 + $0x7b8] sm:$0xff] }
 0x160   :  { %950 = vmatpush2.msra.mxu0 %v790_v27  ;;  %v826_v27 = vld [vmem:[#allocation11 + $0x7b0] sm:$0xff] }
 0x161   :  { %951 = vmatprep.subr.mxu0 %v783_v29  ;;  %v819_v29 = vld [vmem:[#allocation11 + $0x778] sm:$0xff] }
 0x162   :  { %952 = vmatpush2.msra.mxu0 %v782_v30  ;;  %v818_v30 = vld [vmem:[#allocation11 + $0x770] sm:$0xff] }
 0x163   :  { %953 = vmatprep.subr.mxu0 %v775_v31  ;;  %v811_v31 = vld [vmem:[#allocation11 + $0x738] sm:$0xff] }
 0x164   :  { %954 = vmatpush2.msra.mxu0 %v774_v32  ;;  %v810_v32 = vld [vmem:[#allocation11 + $0x730] sm:$0xff] }
 0x165   :  { %955 = vmatprep.subr.mxu0 %v767_v33  ;;  %v803_v33 = vld [vmem:[#allocation11 + $0x6f8] sm:$0xff] }
 0x166   :  { %956 = vmatpush2.msra.mxu0 %v766_v34  ;;  %v802_v34 = vld [vmem:[#allocation11 + $0x6f0] sm:$0xff] }
 0x167   :  { %957 = vmatprep.subr.mxu0 %v759_v35  ;;  %v795_v35 = vld [vmem:[#allocation11 + $0x6b8] sm:$0xff] }
 0x168   :  { %958 = vmatpush2.msra.mxu0 %v758_v36  ;;  %v794_v36 = vld [vmem:[#allocation11 + $0x6b0] sm:$0xff] }
 0x169   :  { %959 = vmatprep.subr.mxu0 %v751_v37  ;;  %v787_v37 = vld [vmem:[#allocation11 + $0x678] sm:$0xff] }
 0x16a   :  { %960 = vmatpush2.msra.mxu0 %v750_v38  ;;  %v786_v38 = vld [vmem:[#allocation11 + $0x670] sm:$0xff] }
 0x16b   :  { %961 = vmatprep.subr.mxu0 %v743_v39  ;;  %v779_v39 = vld [vmem:[#allocation11 + $0x638] sm:$0xff] }
 0x16c   :  { %962 = vmatpush2.msra.mxu0 %v742_v40  ;;  %v778_v40 = vld [vmem:[#allocation11 + $0x630] sm:$0xff] }
 0x16d   :  { %963 = vmatprep.subr.mxu0 %v735_v41  ;;  %v771_v41 = vld [vmem:[#allocation11 + $0x5f8] sm:$0xff] }
 0x16e   :  { %964 = vmatpush2.msra.mxu0 %v734_v42  ;;  %v770_v42 = vld [vmem:[#allocation11 + $0x5f0] sm:$0xff] }
 0x16f   :  { %965 = vmatprep.subr.mxu0 %v727_v43  ;;  %v763_v43 = vld [vmem:[#allocation11 + $0x5b8] sm:$0xff] }
 0x170   :  { %966 = vmatpush2.msra.mxu0 %v726_v44  ;;  %v762_v44 = vld [vmem:[#allocation11 + $0x5b0] sm:$0xff] }
 0x171   :  { %967 = vmatprep.subr.mxu0 %v719_v46  ;;  %v754_v46 = vld [vmem:[#allocation11 + $0x570] sm:$0xff] }
 0x172   :  { %968 = vmatpush2.msra.mxu0 %v718_v47  ;;  %v747_v47 = vld [vmem:[#allocation11 + $0x538] sm:$0xff] }
 0x173   :  { %969 = vmatprep.subr.mxu0 %v711_v48  ;;  %v746_v48 = vld [vmem:[#allocation11 + $0x530] sm:$0xff] }
 0x174   :  { %970 = vmatpush2.msra.mxu0 %v710_v0  ;;  %v739_v0 = vld [vmem:[#allocation11 + $0x4f8] sm:$0xff] }
 0x175   :  { %972 = vmatmul.mubr.f32.vlgmr.msra.gmra.mxu0 %v1799_v10  ;;  %1049 = vmatprep.subr.mxu0 %v707_v50  ;;  %v738_v50 = vld [vmem:[#allocation11 + $0x4f0] sm:$0xff] }
 0x176   :  { %1050 = vmatpush1.msra.mxu0 %v706_v51  ;;  %1113 = vmatprep.mubr.f32.mxu0 %v1781_v28  ;;  %v659_v28 = vld [vmem:[#allocation11 + $0x278] sm:$0xff] }
 0x177   :  { %1051 = vmatprep.subr.mxu0 %v699_v53  ;;  %v731_v51 = vld [vmem:[#allocation11 + $0x4b8] sm:$0xff]  ;;  %v730_v53 = vld [vmem:[#allocation11 + $0x4b0] sm:$0xff] }
 0x178   :  { %1052 = vmatpush1.msra.mxu0 %v698_v55  ;;  %v723_v55 = vld [vmem:[#allocation11 + $0x478] sm:$0xff] }
 0x179   :  { %1053 = vmatprep.subr.mxu0 %v691_v58  ;;  %v722_v58 = vld [vmem:[#allocation11 + $0x470] sm:$0xff] }
 0x17a   :  { %1054 = vmatpush1.msra.mxu0 %v690_v59  ;;  %v715_v59 = vld [vmem:[#allocation11 + $0x438] sm:$0xff] }
 0x17b   :  { %1055 = vmatprep.subr.mxu0 %v683_v61  ;;  %v714_v61 = vld [vmem:[#allocation11 + $0x430] sm:$0xff] }
 0x17c   :  { %1056 = vmatpush1.msra.mxu0 %v682_v62 }
 0x17d   :  { %1057 = vmatprep.subr.mxu0 %v675_v63 }
 0x17e   :  { %1058 = vmatpush1.msra.mxu0 %v674_v1 }
 0x17f   :  { %1059 = vmatprep.subr.mxu0 %v667_v2 }
 0x180   :  { %1060 = vmatpush1.msra.mxu0 %v666_v3 }
 0x181   :  { %1061 = vmatprep.subr.mxu0 %v659_v28 }
 0x182   :  { %1062 = vmatpush1.msra.mxu0 %v658_v4 }
 0x183   :  { %1063 = vmatprep.subr.mxu0 %v651_v5 }
 0x184   :  { %1064 = vmatpush1.msra.mxu0 %v650_v6 }
 0x185   :  { %1065 = vmatprep.subr.mxu0 %v643_v7 }
 0x186   :  { %1066 = vmatpush1.msra.mxu0 %v642_v8  ;;  %v1241_v8 = vld [vmem:[%s2084_s9 + $0x78] sm:$0xff] }
 0x187   :  { %1067 = vmatprep.subr.mxu0 %v635_v9  ;;  %v1256_v9 = vld [vmem:[%s2084_s9 + $0xf0] sm:$0xff] }
 0x188   :  { %1068 = vmatpush1.msra.mxu0 %v634_v11  ;;  %v1239_v11 = vld [vmem:[%s2084_s9 + $0x68] sm:$0xff] }
 0x189   :  { %1069 = vmatprep.subr.mxu0 %v627_v12  ;;  %v1254_v12 = vld [vmem:[%s2084_s9 + $0xe0] sm:$0xff] }
 0x18a   :  { %1070 = vmatpush1.msra.mxu0 %v626_v13  ;;  %v1238_v13 = vld [vmem:[%s2084_s9 + $0x60] sm:$0xff] }
 0x18b   :  { %1071 = vmatprep.subr.mxu0 %v619_v14  ;;  %v1253_v14 = vld [vmem:[%s2084_s9 + $0xd8] sm:$0xff] }
 0x18c   :  { %1072 = vmatpush1.msra.mxu0 %v618_v15  ;;  %v1237_v15 = vld [vmem:[%s2084_s9 + $0x58] sm:$0xff] }
 0x18d   :  { %1073 = vmatprep.subr.mxu0 %v611_v16  ;;  %v1252_v16 = vld [vmem:[%s2084_s9 + $0xd0] sm:$0xff] }
 0x18e   :  { %1074 = vmatpush1.msra.mxu0 %v610_v17  ;;  %v1236_v17 = vld [vmem:[%s2084_s9 + $0x50] sm:$0xff] }
 0x18f   :  { %1075 = vmatprep.subr.mxu0 %v603_v18  ;;  %v1251_v18 = vld [vmem:[%s2084_s9 + $0xc8] sm:$0xff] }
 0x190   :  { %1076 = vmatpush1.msra.mxu0 %v602_v19  ;;  %v1235_v19 = vld [vmem:[%s2084_s9 + $0x48] sm:$0xff] }
 0x191   :  { %1077 = vmatprep.subr.mxu0 %v595_v20  ;;  %v1250_v20 = vld [vmem:[%s2084_s9 + $0xc0] sm:$0xff] }
 0x192   :  { %1078 = vmatpush1.msra.mxu0 %v594_v21  ;;  %v1234_v21 = vld [vmem:[%s2084_s9 + $0x40] sm:$0xff] }
 0x193   :  { %1079 = vmatprep.subr.mxu0 %v587_v22  ;;  %v1249_v22 = vld [vmem:[%s2084_s9 + $0xb8] sm:$0xff] }
 0x194   :  { %1080 = vmatpush1.msra.mxu0 %v586_v23  ;;  %v1233_v23 = vld [vmem:[%s2084_s9 + $0x38] sm:$0xff] }
 0x195   :  { %1081 = vmatprep.subr.mxu0 %v835_v24  ;;  %v1248_v24 = vld [vmem:[%s2084_s9 + $0xb0] sm:$0xff] }
 0x196   :  { %1082 = vmatpush2.msra.mxu0 %v834_v25  ;;  %v1232_v25 = vld [vmem:[%s2084_s9 + $0x30] sm:$0xff] }
 0x197   :  { %1083 = vmatprep.subr.mxu0 %v827_v26  ;;  %v1247_v26 = vld [vmem:[%s2084_s9 + $0xa8] sm:$0xff] }
 0x198   :  { %1084 = vmatpush2.msra.mxu0 %v826_v27  ;;  %v1231_v27 = vld [vmem:[%s2084_s9 + $0x28] sm:$0xff] }
 0x199   :  { %1085 = vmatprep.subr.mxu0 %v819_v29  ;;  %v1246_v29 = vld [vmem:[%s2084_s9 + $0xa0] sm:$0xff] }
 0x19a   :  { %1086 = vmatpush2.msra.mxu0 %v818_v30  ;;  %v1230_v30 = vld [vmem:[%s2084_s9 + $0x20] sm:$0xff] }
 0x19b   :  { %1087 = vmatprep.subr.mxu0 %v811_v31  ;;  %v1245_v31 = vld [vmem:[%s2084_s9 + $0x98] sm:$0xff] }
 0x19c   :  { %1088 = vmatpush2.msra.mxu0 %v810_v32  ;;  %v1229_v32 = vld [vmem:[%s2084_s9 + $0x18] sm:$0xff] }
 0x19d   :  { %1089 = vmatprep.subr.mxu0 %v803_v33  ;;  %v1244_v33 = vld [vmem:[%s2084_s9 + $0x90] sm:$0xff] }
 0x19e   :  { %1090 = vmatpush2.msra.mxu0 %v802_v34  ;;  %v1228_v34 = vld [vmem:[%s2084_s9 + $0x10] sm:$0xff] }
 0x19f   :  { %1091 = vmatprep.subr.mxu0 %v795_v35  ;;  %v1243_v35 = vld [vmem:[%s2084_s9 + $0x88] sm:$0xff] }
 0x1a0   :  { %1092 = vmatpush2.msra.mxu0 %v794_v36  ;;  %v1227_v36 = vld [vmem:[%s2084_s9 + $0x8] sm:$0xff] }
 0x1a1   :  { %1093 = vmatprep.subr.mxu0 %v787_v37  ;;  %v1242_v37 = vld [vmem:[%s2084_s9 + $0x80] sm:$0xff] }
 0x1a2   :  { %1094 = vmatpush2.msra.mxu0 %v786_v38  ;;  %v1226_v38 = vld [vmem:[%s2084_s9] sm:$0xff] }
 0x1a3   :  { %1095 = vmatprep.subr.mxu0 %v779_v39  ;;  %v254_v39 = vsub.s32 0, %v1896_v49 }
 0x1a4   :  { %1096 = vmatpush2.msra.mxu0 %v778_v40  ;;  %v258_v40 = vsub.s32 1, %v1896_v49 }
 0x1a5   :  { %1097 = vmatprep.subr.mxu0 %v771_v41  ;;  %v255_v41 = vrot.slane %v1899_v54, %v254_v39 }
 0x1a6   :  { %1098 = vmatpush2.msra.mxu0 %v770_v42  ;;  %v259_v42 = vrot.slane %v1899_v54, %v258_v40 }
 0x1a7   :  { %1099 = vmatprep.subr.mxu0 %v763_v43  ;;  %v902_v43 = vpop.f32.mrf.mxu1 }
 0x1a8   :  { %1100 = vmatpush2.msra.mxu0 %v762_v44 }
 0x1a9   :  { %1101 = vmatprep.subr.mxu0 %v755_v45 }
 0x1aa   :  { %1102 = vmatpush2.msra.mxu0 %v754_v46  ;;  %v2035_v46 = vld [vmem:[#allocation13] sm:$0xff] }
 0x1ab   :  { %1103 = vmatprep.subr.mxu0 %v747_v47  ;;  %v904_v47 = vpop.f32.mrf.mxu1 }
 0x1ac   :  { %1104 = vmatpush2.msra.mxu0 %v746_v48 }
 0x1ad   :  { %1105 = vmatprep.subr.mxu0 %v739_v0  ;;  %v1133_v0 = vrot.slane %v2035_v46, %v254_v39 }
 0x1ae   :  { %1106 = vmatpush2.msra.mxu0 %v738_v50 }
 0x1af   :  { %1107 = vmatprep.subr.mxu0 %v731_v51  ;;  %v1137_v51 = vrot.slane %v2035_v46, %v258_v40  ;;  %v130_v40 = vld [vmem:[#allocation5 + $0x8] sm:$0xff] }
 0x1b0   :  { %1108 = vmatpush2.msra.mxu0 %v730_v53  ;;  %v262_v53 = vsub.s32 2, %v1896_v49 }
 0x1b1   :  { %1109 = vmatprep.subr.mxu0 %v723_v55 }
 0x1b2   :  { %1110 = vmatpush2.msra.mxu0 %v722_v58  ;;  %v266_v58 = vsub.s32 3, %v1896_v49 }
 0x1b3   :  { %1111 = vmatprep.subr.mxu0 %v715_v59 }
 0x1b4   :  { %1112 = vmatpush2.msra.mxu0 %v714_v61  ;;  %v263_v61 = vrot.slane %v1899_v54, %v262_v53 }
 0x1b5   :  { %1114 = vmatmul.mubr.f32.vlgmr.msra.gmra.mxu0 %v1799_v10  ;;  %v1257_v10 = vld [vmem:[%s2084_s9 + $0xf8] sm:$0xff] }
 0x1b6   :  { %1394 = vmatprep.subr.mxu1 %v1257_v10  ;;  %v1141_v10 = vrot.slane %v2035_v46, %v262_v53 }
 0x1b7   :  { %1395 = vmatpush3.msra.mxu1 %v1241_v8  ;;  %v270_v8 = vsub.s32 4, %v1896_v49 }
 0x1b8   :  { %1396 = vmatprep.subr.mxu1 %v1256_v9 }
 0x1dd   :  { %v1915_v62 = vpop.f32.mrf.mxu0 }
 0x1de   :  { %v363_v44 = vadd.f32 %v1915_v62, %v255_v41 }
 0x1df   :  { %v1917_v63 = vpop.f32.mrf.mxu0 }
 0x1e0   :  { %v365_v45 = vadd.f32 %v1917_v63, %v259_v42  ;;  %v1120_v48 = vadd.f32 %v902_v43, %v363_v44  ;;  %v267_v63 = vrot.slane %v1899_v54, %v266_v58 }
 0x1e2   :  { %v1121_v50 = vadd.f32 %v904_v47, %v365_v45  ;;  %v1170_v55 = vadd.f32 %v1133_v0, %v1120_v48 }
 0x1e4   :  { %v1171_v59 = vadd.f32 %v1137_v51, %v1121_v50  ;;  %v1385_v62 = vmul.f32 -1.442695, %v1170_v55  ;;  %v1157_v50 = vrot.slane %v2035_v46, %v278_v52  ;;  %v1161_v55 = vrot.slane %v2035_v46, %v282_v57 }
 0x1e5   :  { %v1919_v1 = vpop.f32.mrf.mxu0 }
 0x1e6   :  { %1447 = vpow2.f32 %v1385_v62 }
 0x1e7   :  { %v1921_v2 = vpop.f32.mrf.mxu0 }
 0x1ed   :  { %v1923_v3 = vpop.f32.mrf.mxu0 }
 0x1ef   :  { %v1925_v28 = vpop.f32.mrf.mxu0 }
 0x1f5   :  { %v575_v4 = vpop.f32.mrf.mxu0 }
 0x1f6   :  { %v1928_v5 = vadd.f32 %v575_v4, %v1905_v56  ;;  %v1240_v56 = vld [vmem:[%s2084_s9 + $0x70] sm:$0xff]  ;;  %v1386_v4 = vmul.f32 -1.442695, %v1171_v59 }
 0x1f7   :  { %v577_v6 = vpop.f32.mrf.mxu0  ;;  %1397 = vmatpush3.msra.mxu1 %v1240_v56  ;;  %v436_v56 = vadd.f32 %v1921_v2, %v267_v63  ;;  %v1044_v2 = vpop.f32.mrf.mxu1 }
 0x1f8   :  { %v1931_v7 = vadd.f32 %v577_v6, %v1912_v60  ;;  %v1255_v60 = vld [vmem:[%s2084_s9 + $0xe8] sm:$0xff]  ;;  %v434_v6 = vadd.f32 %v1919_v1, %v263_v61  ;;  %1449 = vpow2.f32 %v1386_v4  ;;  %s1682_s9 = smov [#allocation14]  }
 0x1f9   :  { %1398 = vmatprep.subr.mxu1 %v1255_v60  ;;  %s1350_s25 = sshll.u32 %s1682_s9, 4  ;;  %s1351_s25 = int_to_ptr.vmem [resolvable:$true] %s1350_s25 }
 0x1fa   :  { %1399 = vmatpush3.msra.mxu1 %v1239_v11  ;;  %v1145_v11 = vrot.slane %v2035_v46, %v266_v58  ;;  %s1619_s27 = scalar_lea.vmem %s1351_s25, 256  ;;  %p1624_p8 = scmp.lt.s32.totalorder %s1351_s25, %s1351_s25 }
 0x1fb   :  { %1400 = vmatprep.subr.mxu1 %v1254_v12  ;;  %p1620_p7 = scmp.ne.s32.totalorder %s1351_s25, %s1619_s27  ;;  %p1625_p9 = scmp.lt.s32.totalorder %s1619_s27, %s1619_s27 }
 0x1fc   :  { %1401 = vmatpush3.msra.mxu1 %v1238_v13 }
 0x1fd   :  { %1402 = vmatprep.subr.mxu1 %v1253_v14  ;;  %p1626_p10 = por %p1625_p9, %p1624_p8 }
 0x1fe   :  { %1403 = vmatpush3.msra.mxu1 %v1237_v15  ;;  %v271_v15 = vrot.slane %v1899_v54, %v270_v8 }
 0x1ff   :  { %1404 = vmatprep.subr.mxu1 %v1252_v16  ;;  %v274_v16 = vsub.s32 5, %v1896_v49  ;;  %p1627_p11 = pnand %p1626_p10, %p1620_p7 }
 0x200   :  { %1405 = vmatpush3.msra.mxu1 %v1236_v17 }
 0x201   :  { %1406 = vmatprep.subr.mxu1 %v1251_v18 }
 0x202   :  { %1407 = vmatpush3.msra.mxu1 %v1235_v19  ;;  %v505_v19 = vadd.f32 %v1923_v3, %v271_v15 }
 0x203   :  { %1408 = vmatprep.subr.mxu1 %v1250_v20  ;;  %v275_v20 = vrot.slane %v1899_v54, %v274_v16 }
 0x204   :  { %1409 = vmatpush3.msra.mxu1 %v1234_v21 }
 0x205   :  { %1410 = vmatprep.subr.mxu1 %v1249_v22  ;;  %v507_v21 = vadd.f32 %v1925_v28, %v275_v20  ;;  %v1124_v22 = vadd.f32 %v1044_v2, %v505_v19 }
 0x206   :  { %1411 = vmatpush3.msra.mxu1 %v1233_v23  ;;  %v1149_v23 = vrot.slane %v2035_v46, %v270_v8 }
 0x207   :  { %1412 = vmatprep.subr.mxu1 %v1248_v24  ;;  %v1046_v24 = vpop.f32.mrf.mxu1 }
 0x208   :  { %1413 = vmatpush3.msra.mxu1 %v1232_v25  ;;  %v1448_v25 = vpop.eup %1447 }
 0x209   :  { %1414 = vmatprep.subr.mxu1 %v1247_v26  ;;  %v1450_v26 = vpop.eup %1449 }
 0x20a   :  { %1415 = vmatpush3.msra.mxu1 %v1231_v27  ;;  %v1174_v27 = vadd.f32 %v1149_v23, %v1124_v22 }
 0x20b   :  { %1416 = vmatprep.subr.mxu1 %v1246_v29  ;;  %v1125_v29 = vadd.f32 %v1046_v24, %v507_v21 }
 0x20c   :  { %1417 = vmatpush3.msra.mxu1 %v1230_v30  ;;  %v1153_v30 = vrot.slane %v2035_v46, %v274_v16 }
 0x20d   :  { %1418 = vmatprep.subr.mxu1 %v1245_v31  ;;  %v1184_v31 = vadd.f32 1.0, %v1448_v25 }
 0x20e   :  { %1419 = vmatpush3.msra.mxu1 %v1229_v32  ;;  %v1185_v32 = vadd.f32 1.0, %v1450_v26  ;;  %v1175_v3 = vadd.f32 %v1153_v30, %v1125_v29 }
 0x20f   :  { %1420 = vmatprep.subr.mxu1 %v1244_v33 }
 0x210   :  { %1421 = vmatpush3.msra.mxu1 %v1228_v34 }
 0x211   :  { %1422 = vmatprep.subr.mxu1 %v1243_v35 }
 0x212   :  { %1423 = vmatpush3.msra.mxu1 %v1227_v36 }
 0x213   :  { %1424 = vmatprep.subr.mxu1 %v1242_v37  ;;  %v129_v37 = vld [vmem:[#allocation5] sm:$0xff] }
 0x214   :  { %1425 = vmatpush3.msra.mxu1 %v1226_v38 }
 0x235   :  { %v973_v9 = vpop.f32.mrf.mxu0 }
 0x236   :  { %v1122_v60 = vadd.f32 %v973_v9, %v434_v6 }
 0x237   :  { %v975_v12 = vpop.f32.mrf.mxu0 }
 0x238   :  { %v1172_v13 = vadd.f32 %v1141_v10, %v1122_v60  ;;  %v1123_v14 = vadd.f32 %v975_v12, %v436_v56 }
 0x23a   :  { %v1387_v1 = vmul.f32 -1.442695, %v1172_v13  ;;  %v1173_v17 = vadd.f32 %v1145_v11, %v1123_v14 }
 0x23c   :  { %1451 = vpow2.f32 %v1387_v1  ;;  %v1388_v18 = vmul.f32 -1.442695, %v1173_v17 }
 0x23e   :  { %1453 = vpow2.f32 %v1388_v18 }
 0x23f   :  { %1455 = vtanh.f32 %v1174_v27 }
 0x240   :  { %1457 = vrcp.f32 %v1184_v31 }
 0x241   :  { %1459 = vrcp.f32 %v1185_v32 }
 0x249   :  { %v1452_v33 = vpop.eup %1451 }
 0x24a   :  { %v1196_v54 = vadd.f32 1.0, %v1452_v33 }
 0x24b   :  { %v1454_v34 = vpop.eup %1453 }
 0x24c   :  { %1461 = vrcp.f32 %v1196_v54  ;;  %v1197_v28 = vadd.f32 1.0, %v1454_v34  ;;  %v1456_v35 = vpop.eup %1455 }
 0x24d   :  { %1463 = vtanh.f32 %v1175_v3  ;;  %v1458_v36 = vpop.eup %1457 }
 0x24e   :  { %1465 = vrcp.f32 %v1197_v28  ;;  %v1460_v38 = vpop.eup %1459  ;;  %v1218_v42 = vmul.f32 %v1458_v36, %v1456_v35 }
 0x259   :  { %v1462_v39 = vpop.eup %1461 }
 0x25a   :  { %v1464_v41 = vpop.eup %1463  ;;  %v1216_v43 = vmul.f32 %v1462_v39, %v129_v37 }
 0x25b   :  { %v1466_v44 = vpop.eup %1465  ;;  %v1219_v45 = vmul.f32 %v1464_v41, %v1460_v38 }
 0x25c   :  { %v1217_v47 = vmul.f32 %v1466_v44, %v130_v40  ;;  %v1220_v48 = vadd.f32 %v1218_v42, %v1216_v43 }
 0x25e   :  { %v1221_v0 = vadd.f32 %v1219_v45, %v1217_v47  ;;  %1340 = vst [vmem:[#allocation15] sm:$0xff] %v1220_v48 }
 0x260   :  { %1341 = vst [vmem:[#allocation15 + $0x8] sm:$0xff] %v1221_v0 }
 0x275   :  { %v1115_v51 = vpop.f32.mrf.mxu0 }
 0x276   :  { %v1126_v53 = vadd.f32 %v1115_v51, %v1928_v5 }
 0x277   :  { %v1117_v58 = vpop.f32.mrf.mxu0 }
 0x278   :  { %v1176_v59 = vadd.f32 %v1157_v50, %v1126_v53  ;;  %v1127_v61 = vadd.f32 %v1117_v58, %v1931_v7 }
 0x27a   :  { %v1389_v62 = vmul.f32 -1.442695, %v1176_v59  ;;  %v1177_v63 = vadd.f32 %v1161_v55, %v1127_v61 }
 0x27c   :  { %1467 = vpow2.f32 %v1389_v62  ;;  %v1390_v4 = vmul.f32 -1.442695, %v1177_v63 }
 0x27e   :  { %1469 = vpow2.f32 %v1390_v4 }
 0x27f   :  { %1471 = vtanh.f32 %v1220_v48 }
 0x289   :  { %v1468_v6 = vpop.eup %1467 }
 0x28a   :  { %v1210_v10 = vadd.f32 1.0, %v1468_v6 }
 0x28b   :  { %v1470_v8 = vpop.eup %1469 }
 0x28c   :  { %1473 = vrcp.f32 %v1210_v10  ;;  %v1211_v52 = vadd.f32 1.0, %v1470_v8  ;;  %v1472_v49 = vpop.eup %1471 }
 0x28d   :  { %1475 = vtanh.f32 %v1221_v0 }
 0x28e   :  { %1477 = vrcp.f32 %v1211_v52 }
 0x299   :  { %v1474_v5 = vpop.eup %1473 }
 0x29a   :  { %v1476_v57 = vpop.eup %1475  ;;  %v1224_v46 = vmul.f32 %v1474_v5, %v1472_v49 }
 0x29b   :  { %v1478_v9 = vpop.eup %1477 }
 0x29c   :  { %v1225_v56 = vmul.f32 %v1478_v9, %v1476_v57  ;;  %1338 = vst [vmem:[#allocation14] sm:$0xff] %v1224_v46 }
 0x29e   :  { %1329 = vmatprep.mubr.f32.mxu1 %v1225_v56  ;;  %1339 = vst [vmem:[#allocation14 + $0x8] sm:$0xff] %v1225_v56 }
 0x29f   :  { %1330 = vmatmul.mubr.f32.vlgmr.msra.gmra.mxu1 %v1224_v46 }
 0x2a0   :  { %1630 = shalt.err (!%p1627_p11)
}
 0x2a1   :  { %1353 = dma.vmem_to_hbm [thread:$0]  %s1351_s25, 256, %s2087_s12, [#allocation4]  }
 0x2a2   :  { %s1639_s30 = scalar_lea.vmem %s1361_s4, 256  ;;  %p1644_p13 = scmp.lt.s32.totalorder %s1361_s4, %s1361_s4 }
 0x2a3   :  { %p1640_p12 = scmp.ne.s32.totalorder %s1361_s4, %s1639_s30  ;;  %p1645_p0 = scmp.lt.s32.totalorder %s1639_s30, %s1639_s30 }
 0x2a5   :  { %p1646_p1 = por %p1645_p0, %p1644_p13 }
 0x2a7   :  { %p1647_p2 = pnand %p1646_p1, %p1640_p12 }
 0x2a9   :  { %1650 = shalt.err (!%p1647_p2)
}
 0x2aa   :  { %1363 = dma.vmem_to_hbm [thread:$0]  %s1361_s4, 256, %s2088_s13, [#allocation16]   ;;  %v1391_v60 = vld [vmem:[%s2085_s10] ss:$0 sm:$0xff]  ;;  %vm1336_vm4 = vcmask 31744  }
 0x35f   :  { %v1426_v7 = vpop.f32.mrf.mxu1 }
 0x361   :  { %v1427_v11 = vpop.f32.mrf.mxu1 }
 0x362   :  { %v1428_v12 = vadd.f32 %v1427_v11, %v1426_v7 }
 0x364   :  { %v1332_v13 = vadd.f32 %v1428_v12, %v1391_v60 }
 0x366   :  { %v1335_v14 = vmul.f32 10.0, %v1332_v13 }
 0x368   :  { %1337 = vst.msk [vmem:[%s2086_s11] sm:$0xff] %vm1336_vm4, %v1335_v14 }
 0x369   :  { %1667 = dma.done.wait [#allocation4], 256  }
 0x36a   :  { %1668 = vsyncadd [#allocation4], 4294967040 }
 0x36b   :  { %1669 = dma.done.wait [#allocation16], 256  }
 0x36c   :  { %1670 = vsyncadd [#allocation16], 4294967040 }
 0x36d   :  { %1372 = vsyncpa [#allocation3], 1 }
 0x36e   :  { %1373 = vsyncpa [#allocation6], 1 }
 0x36f   :  { %1374 = vsyncpa [#allocation9], 1 }
 0x370   :  { %1375 = vsyncpa [#allocation12], 1 }
 0x371   :  { %1376 = vsyncpa [#allocation4], 1 }
 0x372   :  { %1377 = vsyncpa [#allocation16], 1 }

</bundles_post_ra>
